<compile_context>
chip_gen: v7x
topology: tpu7x:2x2x1
jax: 0.10.0
libtpu: 0.0.40
codegen_flags: <defaults>
</compile_context>

<pallas_src>
import jax
import jax.numpy as jnp
from jax import lax
from jax.experimental import pallas as pl
from jax.experimental.pallas import tpu as pltpu


def _make_kernel(num_layers, seq_len, hidden, vocab_p):
    H = hidden
    L = num_layers

    def kernel(tok_ref, t0_ref, w_ref, b_ref, fcw_ref, fcb_ref, hc0_ref,
               out_ref, hc_out_ref):
        Bp = tok_ref.shape[0]
        lane = lax.broadcasted_iota(jnp.int32, (Bp, vocab_p), 1)

        # Recurrent state carried as values (vregs), not scratch memory.
        h = [hc0_ref[l] for l in range(L)]
        c = [hc0_ref[L + l] for l in range(L)]

        # Build the step-0 one-hot in-kernel from the (Bp,1) token column.
        onehot = (lane == tok_ref[...]).astype(jnp.float32)

        # Fully unrolled time loop (short, static trip count -> scheduler gets
        # cross-iteration visibility for the overlap described above).
        for t in range(seq_len):
            # Recurrent-only gate contributions.  Depend only on step-(t-1)
            # state, NOT on this step's argmax/one-hot, so these MXU pushes can
            # be scheduled under the previous step's FC matmul + argmax tail.
            # (On v7x the dot + add pair can fuse into one MRB accumulation;
            # on v5e/v6e the extra VPU add has slack.)
            hh = []
            for l in range(L):
                w_hh = w_ref[0] if l == 0 else w_ref[2 * l]
                hh.append(jnp.dot(h[l], w_hh,
                                  preferred_element_type=jnp.float32)
                          + b_ref[l])                                 # (Bp,4H)

            x = onehot
            for l in range(L):
                if l == 0:
                    # Layer-0 "input" lives in one-hot vocab space;
                    # emb @ W_ih[0] is pre-folded into T0.
                    ih = jnp.dot(x, t0_ref[...],
                                 preferred_element_type=jnp.float32)
                else:
                    ih = jnp.dot(x, w_ref[2 * l - 1],
                                 preferred_element_type=jnp.float32)
                gates = ih + hh[l]                                    # (Bp,4H)

                # Single whole-vreg EUP activation.  g-gate columns of the
                # weights/bias were pre-scaled by 2 in the wrapper, so
                # tanh(a_g) == 2*sigmoid(2*a_g) - 1 is recovered on the VPU.
                # TODO(synk): verify lax.logistic lowers EUP-only (no divide)
                #             via pl.lower_as_mlir.
                sig = jax.nn.sigmoid(gates)
                i_g = sig[:, 0 * H:1 * H]
                f_g = sig[:, 1 * H:2 * H]
                g_g = 2.0 * sig[:, 2 * H:3 * H] - 1.0
                o_g = sig[:, 3 * H:4 * H]
                c_new = f_g * c[l] + i_g * g_g
                h_new = o_g * jnp.tanh(c_new)
                h[l] = h_new
                c[l] = c_new
                x = h_new

            logits = (jnp.dot(x, fcw_ref[...],
                              preferred_element_type=jnp.float32)
                      + fcb_ref[...])                                 # (Bp,Vp)
            out_ref[t] = logits                                       # lane-dense vst

            # Greedy decode with a SINGLE cross-lane reduction: max over the
            # vocab lanes, then a VPU equality compare builds the next one-hot.
            # Padded vocab lanes carry -1e30 via fc_b so they never win.
            max_val = jnp.max(logits, axis=-1, keepdims=True)
            onehot = (logits == max_val).astype(jnp.float32)

        for l in range(L):
            hc_out_ref[l] = h[l]
            hc_out_ref[L + l] = c[l]

    return kernel


def lstm_no_teacher_forcing(input_token, hidden, params, seq_len):
    h0, c0 = hidden
    emb = params["embedding"]
    L, B, H = h0.shape
    V = emb.shape[0]

    Bp = max(8, ((B + 7) // 8) * 8)          # sublane-dense batch
    Vp = max(128, ((V + 127) // 128) * 128)  # lane-dense vocab
    hi = jax.lax.Precision.HIGHEST

    def pad_batch(x, axis):
        pad = [(0, 0)] * x.ndim
        pad[axis] = (0, Bp - B)
        return jnp.pad(x, pad)

    def scale_g(w):
        # Double the g-gate columns (single-sigmoid trick); exact in f32.
        return jnp.concatenate(
            [w[:, :2 * H], 2.0 * w[:, 2 * H:3 * H], w[:, 3 * H:]], axis=1)

    tok_p = pad_batch(input_token.astype(jnp.int32), 0)              # (Bp, 1)

    # Layer 0: fold the embedding into the input-gate weight (one-hot @ T0).
    # Pinned to highest precision so parity doesn't depend on the tolerance.
    t0 = jnp.dot(emb, params["w_ih"][0], precision=hi)               # (V, 4H)
    t0_p = jnp.pad(scale_g(t0), ((0, Vp - V), (0, 0)))               # (Vp, 4H)

    # One stacked weight input: [w_hh0, w_ih1, w_hh1, w_ih2, w_hh2, ...].
    w_list = [scale_g(params["w_hh"][0])]
    for l in range(1, L):
        w_list.append(scale_g(params["w_ih"][l]))
        w_list.append(scale_g(params["w_hh"][l]))
    w_stack = jnp.stack(w_list)                                      # (2L-1, H, 4H)

    # Biases pre-broadcast (no per-step broadcast_in_dim) and stacked.
    b_stack = jnp.stack([jnp.broadcast_to(scale_g(params["b"][l]), (Bp, 4 * H))
                         for l in range(L)])                         # (L, Bp, 4H)

    # Lane-dense FC; padded logit columns forced to -1e30 via the bias.
    fc_w_p = jnp.pad(params["fc_w"], ((0, 0), (0, Vp - V)))          # (H, Vp)
    fc_b_row = jnp.pad(params["fc_b"][0], (0, Vp - V),
                       constant_values=-1e30)
    fc_b_p = jnp.broadcast_to(fc_b_row[None, :], (Bp, Vp))           # (Bp, Vp)

    # Stacked initial state: rows [0:L] = h0, rows [L:2L] = c0.
    hc0 = jnp.concatenate([pad_batch(h0, 1), pad_batch(c0, 1)], axis=0)

    inputs = [tok_p, t0_p, w_stack, b_stack, fc_w_p, fc_b_p, hc0]

    kernel = _make_kernel(L, seq_len, H, Vp)
    vmem = pltpu.MemorySpace.VMEM
    outs, hc_n = pl.pallas_call(
        kernel,
        out_shape=(
            jax.ShapeDtypeStruct((seq_len, Bp, Vp), jnp.float32),
            jax.ShapeDtypeStruct((2 * L, Bp, H), jnp.float32),
        ),
        in_specs=[pl.BlockSpec(memory_space=vmem) for _ in inputs],
        out_specs=(pl.BlockSpec(memory_space=vmem),
                   pl.BlockSpec(memory_space=vmem)),
    )(*inputs)

    # (S, Bp, Vp) -> (B, S, V) to match torch.cat(outputs, dim=1)
    out = jnp.transpose(outs[:, :B, :V], (1, 0, 2))
    return out, (hc_n[:L, :B, :], hc_n[L:, :B, :])


def init_params(key, vocab, embed, hidden, num_layers):
    ks = jax.random.split(key, 2 + 4 * num_layers + 2)
    scale = 1.0 / float(jnp.sqrt(jnp.float32(hidden)))
    emb = jax.random.normal(ks[0], (vocab, embed), jnp.float32)
    w_ih, w_hh, b = [], [], []
    ki = 1
    for l in range(num_layers):
        in_dim = embed if l == 0 else hidden
        w_ih.append(jax.random.uniform(ks[ki], (in_dim, 4 * hidden), jnp.float32, -scale, scale)); ki += 1
        w_hh.append(jax.random.uniform(ks[ki], (hidden, 4 * hidden), jnp.float32, -scale, scale)); ki += 1
        b_ih = jax.random.uniform(ks[ki], (4 * hidden,), jnp.float32, -scale, scale); ki += 1
        b_hh = jax.random.uniform(ks[ki], (4 * hidden,), jnp.float32, -scale, scale); ki += 1
        b.append((b_ih + b_hh)[None, :])
    fc_w = jax.random.uniform(ks[ki], (hidden, vocab), jnp.float32, -scale, scale); ki += 1
    fc_b = jax.random.uniform(ks[ki], (vocab,), jnp.float32, -scale, scale)[None, :]
    return dict(embedding=emb, w_ih=w_ih, w_hh=w_hh, b=b, fc_w=fc_w, fc_b=fc_b)


def reference_forward(input_token, hidden, params, seq_len):
    # Plain-JAX reference mirroring the PyTorch forward (f32-highest matmuls).
    hi = jax.lax.Precision.HIGHEST
    h, c = hidden
    L, _, H = h.shape
    token = input_token[:, 0]
    outs = []
    for _ in range(seq_len):
        x = params["embedding"][token]
        new_h, new_c = [], []
        for l in range(L):
            gates = (jnp.dot(x, params["w_ih"][l], precision=hi)
                     + jnp.dot(h[l], params["w_hh"][l], precision=hi)
                     + params["b"][l][0])
            i_g = jax.nn.sigmoid(gates[:, :H])
            f_g = jax.nn.sigmoid(gates[:, H:2 * H])
            g_g = jnp.tanh(gates[:, 2 * H:3 * H])
            o_g = jax.nn.sigmoid(gates[:, 3 * H:])
            c_new = f_g * c[l] + i_g * g_g
            h_new = o_g * jnp.tanh(c_new)
            new_h.append(h_new)
            new_c.append(c_new)
            x = h_new
        h = jnp.stack(new_h)
        c = jnp.stack(new_c)
        logits = jnp.dot(x, params["fc_w"], precision=hi) + params["fc_b"][0]
        outs.append(logits)
        token = jnp.argmax(logits, axis=-1)
    return jnp.stack(outs, axis=1), (h, c)


if __name__ == "__main__":
    vocab_size, embed_size, hidden_size, num_layers, seq_len, batch = 64, 32, 32, 2, 8, 2

    key = jax.random.PRNGKey(0)
    pkey, tkey = jax.random.split(key)
    params = init_params(pkey, vocab_size, embed_size, hidden_size, num_layers)

    input_token = jax.random.randint(tkey, (batch, 1), 0, vocab_size, jnp.int32)
    h0 = jnp.zeros((num_layers, batch, hidden_size), jnp.float32)
    c0 = jnp.zeros((num_layers, batch, hidden_size), jnp.float32)

    outputs, (h_n, c_n) = lstm_no_teacher_forcing(input_token, (h0, c0), params, seq_len)
    jax.block_until_ready((outputs, h_n, c_n))

    ref_out, (ref_h, ref_c) = reference_forward(input_token, (h0, c0), params, seq_len)
    assert outputs.shape == (batch, seq_len, vocab_size)
    assert jnp.allclose(outputs, ref_out, atol=1e-3, rtol=1e-3)
    assert jnp.allclose(h_n, ref_h, atol=1e-3, rtol=1e-3)
    assert jnp.allclose(c_n, ref_c, atol=1e-3, rtol=1e-3)

    print("KERNEL_OK")
</pallas_src>

<mosaic_0001>
module attributes {stable_mosaic.version = 11 : i64} {
  func.func @kernel(%arg0: memref<8x1xi32, #tpu.memory_space<vmem>>, %arg1: memref<128x128xf32, #tpu.memory_space<vmem>>, %arg2: memref<3x32x128xf32, #tpu.memory_space<vmem>>, %arg3: memref<2x8x128xf32, #tpu.memory_space<vmem>>, %arg4: memref<32x128xf32, #tpu.memory_space<vmem>>, %arg5: memref<8x128xf32, #tpu.memory_space<vmem>>, %arg6: memref<4x8x32xf32, #tpu.memory_space<vmem>>, %arg7: memref<8x8x128xf32, #tpu.memory_space<vmem>>, %arg8: memref<4x8x32xf32, #tpu.memory_space<vmem>>) attributes {dimension_semantics = [], scalar_prefetch = 0 : i64, scratch_operands = 0 : i64, tpu.core_type = #tpu.core_type<tc>} {
    %0 = tpu.iota {dimensions = array<i32: 1>} : vector<8x128xi32>
    %c0 = arith.constant 0 : index
    %c0_0 = arith.constant 0 : index
    %c0_1 = arith.constant 0 : index
    %1 = vector.load %arg6[%c0, %c0_0, %c0_1] : memref<4x8x32xf32, #tpu.memory_space<vmem>>, vector<1x8x32xf32>
    %2 = vector.shape_cast %1 : vector<1x8x32xf32> to vector<8x32xf32>
    %c1 = arith.constant 1 : index
    %c0_2 = arith.constant 0 : index
    %c0_3 = arith.constant 0 : index
    %3 = vector.load %arg6[%c1, %c0_2, %c0_3] : memref<4x8x32xf32, #tpu.memory_space<vmem>>, vector<1x8x32xf32>
    %4 = vector.shape_cast %3 : vector<1x8x32xf32> to vector<8x32xf32>
    %c2 = arith.constant 2 : index
    %c0_4 = arith.constant 0 : index
    %c0_5 = arith.constant 0 : index
    %5 = vector.load %arg6[%c2, %c0_4, %c0_5] : memref<4x8x32xf32, #tpu.memory_space<vmem>>, vector<1x8x32xf32>
    %6 = vector.shape_cast %5 : vector<1x8x32xf32> to vector<8x32xf32>
    %c3 = arith.constant 3 : index
    %c0_6 = arith.constant 0 : index
    %c0_7 = arith.constant 0 : index
    %7 = vector.load %arg6[%c3, %c0_6, %c0_7] : memref<4x8x32xf32, #tpu.memory_space<vmem>>, vector<1x8x32xf32>
    %8 = vector.shape_cast %7 : vector<1x8x32xf32> to vector<8x32xf32>
    %c0_8 = arith.constant 0 : index
    %c0_9 = arith.constant 0 : index
    %9 = vector.load %arg0[%c0_8, %c0_9] : memref<8x1xi32, #tpu.memory_space<vmem>>, vector<8x1xi32>
    %10 = vector.broadcast %9 : vector<8x1xi32> to vector<8x128xi32>
    %11 = arith.cmpi eq, %0, %10 : vector<8x128xi32>
    %12 = arith.extui %11 : vector<8x128xi1> to vector<8x128xi32>
    %13 = arith.sitofp %12 : vector<8x128xi32> to vector<8x128xf32>
    %c0_10 = arith.constant 0 : index
    %c0_11 = arith.constant 0 : index
    %c0_12 = arith.constant 0 : index
    %14 = vector.load %arg2[%c0_10, %c0_11, %c0_12] : memref<3x32x128xf32, #tpu.memory_space<vmem>>, vector<1x32x128xf32>
    %15 = vector.shape_cast %14 : vector<1x32x128xf32> to vector<32x128xf32>
    %cst = arith.constant dense<0.000000e+00> : vector<8x128xf32>
    %16 = tpu.matmul %2, %15, %cst {dimension_numbers = #tpu.dot_dimension_numbers<[1], [0], [0], [1], [0, 0, 1, 1], [], []>} : vector<8x32xf32>, vector<32x128xf32>, vector<8x128xf32> -> vector<8x128xf32>
    %c0_13 = arith.constant 0 : index
    %c0_14 = arith.constant 0 : index
    %c0_15 = arith.constant 0 : index
    %17 = vector.load %arg3[%c0_13, %c0_14, %c0_15] : memref<2x8x128xf32, #tpu.memory_space<vmem>>, vector<1x8x128xf32>
    %18 = vector.shape_cast %17 : vector<1x8x128xf32> to vector<8x128xf32>
    %19 = arith.addf %16, %18 : vector<8x128xf32>
    %c2_16 = arith.constant 2 : index
    %c0_17 = arith.constant 0 : index
    %c0_18 = arith.constant 0 : index
    %20 = vector.load %arg2[%c2_16, %c0_17, %c0_18] : memref<3x32x128xf32, #tpu.memory_space<vmem>>, vector<1x32x128xf32>
    %21 = vector.shape_cast %20 : vector<1x32x128xf32> to vector<32x128xf32>
    %cst_19 = arith.constant dense<0.000000e+00> : vector<8x128xf32>
    %22 = tpu.matmul %4, %21, %cst_19 {dimension_numbers = #tpu.dot_dimension_numbers<[1], [0], [0], [1], [0, 0, 1, 1], [], []>} : vector<8x32xf32>, vector<32x128xf32>, vector<8x128xf32> -> vector<8x128xf32>
    %c1_20 = arith.constant 1 : index
    %c0_21 = arith.constant 0 : index
    %c0_22 = arith.constant 0 : index
    %23 = vector.load %arg3[%c1_20, %c0_21, %c0_22] : memref<2x8x128xf32, #tpu.memory_space<vmem>>, vector<1x8x128xf32>
    %24 = vector.shape_cast %23 : vector<1x8x128xf32> to vector<8x128xf32>
    %25 = arith.addf %22, %24 : vector<8x128xf32>
    %c0_23 = arith.constant 0 : index
    %c0_24 = arith.constant 0 : index
    %26 = vector.load %arg1[%c0_23, %c0_24] : memref<128x128xf32, #tpu.memory_space<vmem>>, vector<128x128xf32>
    %cst_25 = arith.constant dense<0.000000e+00> : vector<8x128xf32>
    %27 = tpu.matmul %13, %26, %cst_25 {dimension_numbers = #tpu.dot_dimension_numbers<[1], [0], [0], [1], [0, 0, 1, 1], [], []>} : vector<8x128xf32>, vector<128x128xf32>, vector<8x128xf32> -> vector<8x128xf32>
    %28 = arith.addf %27, %19 : vector<8x128xf32>
    %29 = arith.negf %28 : vector<8x128xf32>
    %30 = math.exp %29 : vector<8x128xf32>
    %cst_26 = arith.constant 1.000000e+00 : f32
    %31 = vector.broadcast %cst_26 : f32 to vector<8x128xf32>
    %32 = arith.addf %31, %30 : vector<8x128xf32>
    %33 = arith.divf %31, %32 : vector<8x128xf32>
    %34 = vector.extract_strided_slice %33 {offsets = [0, 0], sizes = [8, 32], strides = [1, 1]} : vector<8x128xf32> to vector<8x32xf32>
    %35 = vector.extract_strided_slice %33 {offsets = [0, 32], sizes = [8, 32], strides = [1, 1]} : vector<8x128xf32> to vector<8x32xf32>
    %36 = vector.extract_strided_slice %33 {offsets = [0, 64], sizes = [8, 32], strides = [1, 1]} : vector<8x128xf32> to vector<8x32xf32>
    %cst_27 = arith.constant 2.000000e+00 : f32
    %37 = vector.broadcast %cst_27 : f32 to vector<8x32xf32>
    %38 = arith.mulf %37, %36 : vector<8x32xf32>
    %cst_28 = arith.constant 1.000000e+00 : f32
    %39 = vector.broadcast %cst_28 : f32 to vector<8x32xf32>
    %40 = arith.subf %38, %39 : vector<8x32xf32>
    %41 = vector.extract_strided_slice %33 {offsets = [0, 96], sizes = [8, 32], strides = [1, 1]} : vector<8x128xf32> to vector<8x32xf32>
    %42 = arith.mulf %35, %6 : vector<8x32xf32>
    %43 = arith.mulf %34, %40 : vector<8x32xf32>
    %44 = arith.addf %42, %43 : vector<8x32xf32>
    %45 = math.tanh %44 : vector<8x32xf32>
    %46 = arith.mulf %41, %45 : vector<8x32xf32>
    %c1_29 = arith.constant 1 : index
    %c0_30 = arith.constant 0 : index
    %c0_31 = arith.constant 0 : index
    %47 = vector.load %arg2[%c1_29, %c0_30, %c0_31] : memref<3x32x128xf32, #tpu.memory_space<vmem>>, vector<1x32x128xf32>
    %48 = vector.shape_cast %47 : vector<1x32x128xf32> to vector<32x128xf32>
    %cst_32 = arith.constant dense<0.000000e+00> : vector<8x128xf32>
    %49 = tpu.matmul %46, %48, %cst_32 {dimension_numbers = #tpu.dot_dimension_numbers<[1], [0], [0], [1], [0, 0, 1, 1], [], []>} : vector<8x32xf32>, vector<32x128xf32>, vector<8x128xf32> -> vector<8x128xf32>
    %50 = arith.addf %49, %25 : vector<8x128xf32>
    %51 = arith.negf %50 : vector<8x128xf32>
    %52 = math.exp %51 : vector<8x128xf32>
    %cst_33 = arith.constant 1.000000e+00 : f32
    %53 = vector.broadcast %cst_33 : f32 to vector<8x128xf32>
    %54 = arith.addf %53, %52 : vector<8x128xf32>
    %55 = arith.divf %53, %54 : vector<8x128xf32>
    %56 = vector.extract_strided_slice %55 {offsets = [0, 0], sizes = [8, 32], strides = [1, 1]} : vector<8x128xf32> to vector<8x32xf32>
    %57 = vector.extract_strided_slice %55 {offsets = [0, 32], sizes = [8, 32], strides = [1, 1]} : vector<8x128xf32> to vector<8x32xf32>
    %58 = vector.extract_strided_slice %55 {offsets = [0, 64], sizes = [8, 32], strides = [1, 1]} : vector<8x128xf32> to vector<8x32xf32>
    %cst_34 = arith.constant 2.000000e+00 : f32
    %59 = vector.broadcast %cst_34 : f32 to vector<8x32xf32>
    %60 = arith.mulf %59, %58 : vector<8x32xf32>
    %cst_35 = arith.constant 1.000000e+00 : f32
    %61 = vector.broadcast %cst_35 : f32 to vector<8x32xf32>
    %62 = arith.subf %60, %61 : vector<8x32xf32>
    %63 = vector.extract_strided_slice %55 {offsets = [0, 96], sizes = [8, 32], strides = [1, 1]} : vector<8x128xf32> to vector<8x32xf32>
    %64 = arith.mulf %57, %8 : vector<8x32xf32>
    %65 = arith.mulf %56, %62 : vector<8x32xf32>
    %66 = arith.addf %64, %65 : vector<8x32xf32>
    %67 = math.tanh %66 : vector<8x32xf32>
    %68 = arith.mulf %63, %67 : vector<8x32xf32>
    %c0_36 = arith.constant 0 : index
    %c0_37 = arith.constant 0 : index
    %69 = vector.load %arg4[%c0_36, %c0_37] : memref<32x128xf32, #tpu.memory_space<vmem>>, vector<32x128xf32>
    %cst_38 = arith.constant dense<0.000000e+00> : vector<8x128xf32>
    %70 = tpu.matmul %68, %69, %cst_38 {dimension_numbers = #tpu.dot_dimension_numbers<[1], [0], [0], [1], [0, 0, 1, 1], [], []>} : vector<8x32xf32>, vector<32x128xf32>, vector<8x128xf32> -> vector<8x128xf32>
    %c0_39 = arith.constant 0 : index
    %c0_40 = arith.constant 0 : index
    %71 = vector.load %arg5[%c0_39, %c0_40] : memref<8x128xf32, #tpu.memory_space<vmem>>, vector<8x128xf32>
    %72 = arith.addf %70, %71 : vector<8x128xf32>
    %c0_41 = arith.constant 0 : index
    %c0_42 = arith.constant 0 : index
    %c0_43 = arith.constant 0 : index
    %73 = vector.load %arg7[%c0_41, %c0_42, %c0_43] : memref<8x8x128xf32, #tpu.memory_space<vmem>>, vector<1x8x128xf32>
    %74 = vector.shape_cast %73 : vector<1x8x128xf32> to vector<8x128xf32>
    %75 = vector.shape_cast %72 : vector<8x128xf32> to vector<1x8x128xf32>
    tpu.vector_store %arg7[%c0_41, %c0_42, %c0_43], %75 {strides = array<i32>} : memref<8x8x128xf32, #tpu.memory_space<vmem>>, vector<1x8x128xf32>,
    %cst_44 = arith.constant dense<0xFF800000> : vector<8xf32>
    %76 = vector.multi_reduction <maximumf>, %72, %cst_44 [1] : vector<8x128xf32> to vector<8xf32>
    %77 = vector.shape_cast %76 : vector<8xf32> to vector<8x1xf32>
    %78 = vector.broadcast %77 : vector<8x1xf32> to vector<8x128xf32>
    %79 = arith.cmpf oeq, %72, %78 : vector<8x128xf32>
    %80 = arith.extui %79 : vector<8x128xi1> to vector<8x128xi32>
    %81 = arith.sitofp %80 : vector<8x128xi32> to vector<8x128xf32>
    %c0_45 = arith.constant 0 : index
    %c0_46 = arith.constant 0 : index
    %c0_47 = arith.constant 0 : index
    %82 = vector.load %arg2[%c0_45, %c0_46, %c0_47] : memref<3x32x128xf32, #tpu.memory_space<vmem>>, vector<1x32x128xf32>
    %83 = vector.shape_cast %82 : vector<1x32x128xf32> to vector<32x128xf32>
    %cst_48 = arith.constant dense<0.000000e+00> : vector<8x128xf32>
    %84 = tpu.matmul %46, %83, %cst_48 {dimension_numbers = #tpu.dot_dimension_numbers<[1], [0], [0], [1], [0, 0, 1, 1], [], []>} : vector<8x32xf32>, vector<32x128xf32>, vector<8x128xf32> -> vector<8x128xf32>
    %c0_49 = arith.constant 0 : index
    %c0_50 = arith.constant 0 : index
    %c0_51 = arith.constant 0 : index
    %85 = vector.load %arg3[%c0_49, %c0_50, %c0_51] : memref<2x8x128xf32, #tpu.memory_space<vmem>>, vector<1x8x128xf32>
    %86 = vector.shape_cast %85 : vector<1x8x128xf32> to vector<8x128xf32>
    %87 = arith.addf %84, %86 : vector<8x128xf32>
    %c2_52 = arith.constant 2 : index
    %c0_53 = arith.constant 0 : index
    %c0_54 = arith.constant 0 : index
    %88 = vector.load %arg2[%c2_52, %c0_53, %c0_54] : memref<3x32x128xf32, #tpu.memory_space<vmem>>, vector<1x32x128xf32>
    %89 = vector.shape_cast %88 : vector<1x32x128xf32> to vector<32x128xf32>
    %cst_55 = arith.constant dense<0.000000e+00> : vector<8x128xf32>
    %90 = tpu.matmul %68, %89, %cst_55 {dimension_numbers = #tpu.dot_dimension_numbers<[1], [0], [0], [1], [0, 0, 1, 1], [], []>} : vector<8x32xf32>, vector<32x128xf32>, vector<8x128xf32> -> vector<8x128xf32>
    %c1_56 = arith.constant 1 : index
    %c0_57 = arith.constant 0 : index
    %c0_58 = arith.constant 0 : index
    %91 = vector.load %arg3[%c1_56, %c0_57, %c0_58] : memref<2x8x128xf32, #tpu.memory_space<vmem>>, vector<1x8x128xf32>
    %92 = vector.shape_cast %91 : vector<1x8x128xf32> to vector<8x128xf32>
    %93 = arith.addf %90, %92 : vector<8x128xf32>
    %c0_59 = arith.constant 0 : index
    %c0_60 = arith.constant 0 : index
    %94 = vector.load %arg1[%c0_59, %c0_60] : memref<128x128xf32, #tpu.memory_space<vmem>>, vector<128x128xf32>
    %cst_61 = arith.constant dense<0.000000e+00> : vector<8x128xf32>
    %95 = tpu.matmul %81, %94, %cst_61 {dimension_numbers = #tpu.dot_dimension_numbers<[1], [0], [0], [1], [0, 0, 1, 1], [], []>} : vector<8x128xf32>, vector<128x128xf32>, vector<8x128xf32> -> vector<8x128xf32>
    %96 = arith.addf %95, %87 : vector<8x128xf32>
    %97 = arith.negf %96 : vector<8x128xf32>
    %98 = math.exp %97 : vector<8x128xf32>
    %cst_62 = arith.constant 1.000000e+00 : f32
    %99 = vector.broadcast %cst_62 : f32 to vector<8x128xf32>
    %100 = arith.addf %99, %98 : vector<8x128xf32>
    %101 = arith.divf %99, %100 : vector<8x128xf32>
    %102 = vector.extract_strided_slice %101 {offsets = [0, 0], sizes = [8, 32], strides = [1, 1]} : vector<8x128xf32> to vector<8x32xf32>
    %103 = vector.extract_strided_slice %101 {offsets = [0, 32], sizes = [8, 32], strides = [1, 1]} : vector<8x128xf32> to vector<8x32xf32>
    %104 = vector.extract_strided_slice %101 {offsets = [0, 64], sizes = [8, 32], strides = [1, 1]} : vector<8x128xf32> to vector<8x32xf32>
    %cst_63 = arith.constant 2.000000e+00 : f32
    %105 = vector.broadcast %cst_63 : f32 to vector<8x32xf32>
    %106 = arith.mulf %105, %104 : vector<8x32xf32>
    %cst_64 = arith.constant 1.000000e+00 : f32
    %107 = vector.broadcast %cst_64 : f32 to vector<8x32xf32>
    %108 = arith.subf %106, %107 : vector<8x32xf32>
    %109 = vector.extract_strided_slice %101 {offsets = [0, 96], sizes = [8, 32], strides = [1, 1]} : vector<8x128xf32> to vector<8x32xf32>
    %110 = arith.mulf %103, %44 : vector<8x32xf32>
    %111 = arith.mulf %102, %108 : vector<8x32xf32>
    %112 = arith.addf %110, %111 : vector<8x32xf32>
    %113 = math.tanh %112 : vector<8x32xf32>
    %114 = arith.mulf %109, %113 : vector<8x32xf32>
    %c1_65 = arith.constant 1 : index
    %c0_66 = arith.constant 0 : index
    %c0_67 = arith.constant 0 : index
    %115 = vector.load %arg2[%c1_65, %c0_66, %c0_67] : memref<3x32x128xf32, #tpu.memory_space<vmem>>, vector<1x32x128xf32>
    %116 = vector.shape_cast %115 : vector<1x32x128xf32> to vector<32x128xf32>
    %cst_68 = arith.constant dense<0.000000e+00> : vector<8x128xf32>
    %117 = tpu.matmul %114, %116, %cst_68 {dimension_numbers = #tpu.dot_dimension_numbers<[1], [0], [0], [1], [0, 0, 1, 1], [], []>} : vector<8x32xf32>, vector<32x128xf32>, vector<8x128xf32> -> vector<8x128xf32>
    %118 = arith.addf %117, %93 : vector<8x128xf32>
    %119 = arith.negf %118 : vector<8x128xf32>
    %120 = math.exp %119 : vector<8x128xf32>
    %cst_69 = arith.constant 1.000000e+00 : f32
    %121 = vector.broadcast %cst_69 : f32 to vector<8x128xf32>
    %122 = arith.addf %121, %120 : vector<8x128xf32>
    %123 = arith.divf %121, %122 : vector<8x128xf32>
    %124 = vector.extract_strided_slice %123 {offsets = [0, 0], sizes = [8, 32], strides = [1, 1]} : vector<8x128xf32> to vector<8x32xf32>
    %125 = vector.extract_strided_slice %123 {offsets = [0, 32], sizes = [8, 32], strides = [1, 1]} : vector<8x128xf32> to vector<8x32xf32>
    %126 = vector.extract_strided_slice %123 {offsets = [0, 64], sizes = [8, 32], strides = [1, 1]} : vector<8x128xf32> to vector<8x32xf32>
    %cst_70 = arith.constant 2.000000e+00 : f32
    %127 = vector.broadcast %cst_70 : f32 to vector<8x32xf32>
    %128 = arith.mulf %127, %126 : vector<8x32xf32>
    %cst_71 = arith.constant 1.000000e+00 : f32
    %129 = vector.broadcast %cst_71 : f32 to vector<8x32xf32>
    %130 = arith.subf %128, %129 : vector<8x32xf32>
    %131 = vector.extract_strided_slice %123 {offsets = [0, 96], sizes = [8, 32], strides = [1, 1]} : vector<8x128xf32> to vector<8x32xf32>
    %132 = arith.mulf %125, %66 : vector<8x32xf32>
    %133 = arith.mulf %124, %130 : vector<8x32xf32>
    %134 = arith.addf %132, %133 : vector<8x32xf32>
    %135 = math.tanh %134 : vector<8x32xf32>
    %136 = arith.mulf %131, %135 : vector<8x32xf32>
    %c0_72 = arith.constant 0 : index
    %c0_73 = arith.constant 0 : index
    %137 = vector.load %arg4[%c0_72, %c0_73] : memref<32x128xf32, #tpu.memory_space<vmem>>, vector<32x128xf32>
    %cst_74 = arith.constant dense<0.000000e+00> : vector<8x128xf32>
    %138 = tpu.matmul %136, %137, %cst_74 {dimension_numbers = #tpu.dot_dimension_numbers<[1], [0], [0], [1], [0, 0, 1, 1], [], []>} : vector<8x32xf32>, vector<32x128xf32>, vector<8x128xf32> -> vector<8x128xf32>
    %c0_75 = arith.constant 0 : index
    %c0_76 = arith.constant 0 : index
    %139 = vector.load %arg5[%c0_75, %c0_76] : memref<8x128xf32, #tpu.memory_space<vmem>>, vector<8x128xf32>
    %140 = arith.addf %138, %139 : vector<8x128xf32>
    %c1_77 = arith.constant 1 : index
    %c0_78 = arith.constant 0 : index
    %c0_79 = arith.constant 0 : index
    %141 = vector.load %arg7[%c1_77, %c0_78, %c0_79] : memref<8x8x128xf32, #tpu.memory_space<vmem>>, vector<1x8x128xf32>
    %142 = vector.shape_cast %141 : vector<1x8x128xf32> to vector<8x128xf32>
    %143 = vector.shape_cast %140 : vector<8x128xf32> to vector<1x8x128xf32>
    tpu.vector_store %arg7[%c1_77, %c0_78, %c0_79], %143 {strides = array<i32>} : memref<8x8x128xf32, #tpu.memory_space<vmem>>, vector<1x8x128xf32>,
    %cst_80 = arith.constant dense<0xFF800000> : vector<8xf32>
    %144 = vector.multi_reduction <maximumf>, %140, %cst_80 [1] : vector<8x128xf32> to vector<8xf32>
    %145 = vector.shape_cast %144 : vector<8xf32> to vector<8x1xf32>
    %146 = vector.broadcast %145 : vector<8x1xf32> to vector<8x128xf32>
    %147 = arith.cmpf oeq, %140, %146 : vector<8x128xf32>
    %148 = arith.extui %147 : vector<8x128xi1> to vector<8x128xi32>
    %149 = arith.sitofp %148 : vector<8x128xi32> to vector<8x128xf32>
    %c0_81 = arith.constant 0 : index
    %c0_82 = arith.constant 0 : index
    %c0_83 = arith.constant 0 : index
    %150 = vector.load %arg2[%c0_81, %c0_82, %c0_83] : memref<3x32x128xf32, #tpu.memory_space<vmem>>, vector<1x32x128xf32>
    %151 = vector.shape_cast %150 : vector<1x32x128xf32> to vector<32x128xf32>
    %cst_84 = arith.constant dense<0.000000e+00> : vector<8x128xf32>
    %152 = tpu.matmul %114, %151, %cst_84 {dimension_numbers = #tpu.dot_dimension_numbers<[1], [0], [0], [1], [0, 0, 1, 1], [], []>} : vector<8x32xf32>, vector<32x128xf32>, vector<8x128xf32> -> vector<8x128xf32>
    %c0_85 = arith.constant 0 : index
    %c0_86 = arith.constant 0 : index
    %c0_87 = arith.constant 0 : index
    %153 = vector.load %arg3[%c0_85, %c0_86, %c0_87] : memref<2x8x128xf32, #tpu.memory_space<vmem>>, vector<1x8x128xf32>
    %154 = vector.shape_cast %153 : vector<1x8x128xf32> to vector<8x128xf32>
    %155 = arith.addf %152, %154 : vector<8x128xf32>
    %c2_88 = arith.constant 2 : index
    %c0_89 = arith.constant 0 : index
    %c0_90 = arith.constant 0 : index
    %156 = vector.load %arg2[%c2_88, %c0_89, %c0_90] : memref<3x32x128xf32, #tpu.memory_space<vmem>>, vector<1x32x128xf32>
    %157 = vector.shape_cast %156 : vector<1x32x128xf32> to vector<32x128xf32>
    %cst_91 = arith.constant dense<0.000000e+00> : vector<8x128xf32>
    %158 = tpu.matmul %136, %157, %cst_91 {dimension_numbers = #tpu.dot_dimension_numbers<[1], [0], [0], [1], [0, 0, 1, 1], [], []>} : vector<8x32xf32>, vector<32x128xf32>, vector<8x128xf32> -> vector<8x128xf32>
    %c1_92 = arith.constant 1 : index
    %c0_93 = arith.constant 0 : index
    %c0_94 = arith.constant 0 : index
    %159 = vector.load %arg3[%c1_92, %c0_93, %c0_94] : memref<2x8x128xf32, #tpu.memory_space<vmem>>, vector<1x8x128xf32>
    %160 = vector.shape_cast %159 : vector<1x8x128xf32> to vector<8x128xf32>
    %161 = arith.addf %158, %160 : vector<8x128xf32>
    %c0_95 = arith.constant 0 : index
    %c0_96 = arith.constant 0 : index
    %162 = vector.load %arg1[%c0_95, %c0_96] : memref<128x128xf32, #tpu.memory_space<vmem>>, vector<128x128xf32>
    %cst_97 = arith.constant dense<0.000000e+00> : vector<8x128xf32>
    %163 = tpu.matmul %149, %162, %cst_97 {dimension_numbers = #tpu.dot_dimension_numbers<[1], [0], [0], [1], [0, 0, 1, 1], [], []>} : vector<8x128xf32>, vector<128x128xf32>, vector<8x128xf32> -> vector<8x128xf32>
    %164 = arith.addf %163, %155 : vector<8x128xf32>
    %165 = arith.negf %164 : vector<8x128xf32>
    %166 = math.exp %165 : vector<8x128xf32>
    %cst_98 = arith.constant 1.000000e+00 : f32
    %167 = vector.broadcast %cst_98 : f32 to vector<8x128xf32>
    %168 = arith.addf %167, %166 : vector<8x128xf32>
    %169 = arith.divf %167, %168 : vector<8x128xf32>
    %170 = vector.extract_strided_slice %169 {offsets = [0, 0], sizes = [8, 32], strides = [1, 1]} : vector<8x128xf32> to vector<8x32xf32>
    %171 = vector.extract_strided_slice %169 {offsets = [0, 32], sizes = [8, 32], strides = [1, 1]} : vector<8x128xf32> to vector<8x32xf32>
    %172 = vector.extract_strided_slice %169 {offsets = [0, 64], sizes = [8, 32], strides = [1, 1]} : vector<8x128xf32> to vector<8x32xf32>
    %cst_99 = arith.constant 2.000000e+00 : f32
    %173 = vector.broadcast %cst_99 : f32 to vector<8x32xf32>
    %174 = arith.mulf %173, %172 : vector<8x32xf32>
    %cst_100 = arith.constant 1.000000e+00 : f32
    %175 = vector.broadcast %cst_100 : f32 to vector<8x32xf32>
    %176 = arith.subf %174, %175 : vector<8x32xf32>
    %177 = vector.extract_strided_slice %169 {offsets = [0, 96], sizes = [8, 32], strides = [1, 1]} : vector<8x128xf32> to vector<8x32xf32>
    %178 = arith.mulf %171, %112 : vector<8x32xf32>
    %179 = arith.mulf %170, %176 : vector<8x32xf32>
    %180 = arith.addf %178, %179 : vector<8x32xf32>
    %181 = math.tanh %180 : vector<8x32xf32>
    %182 = arith.mulf %177, %181 : vector<8x32xf32>
    %c1_101 = arith.constant 1 : index
    %c0_102 = arith.constant 0 : index
    %c0_103 = arith.constant 0 : index
    %183 = vector.load %arg2[%c1_101, %c0_102, %c0_103] : memref<3x32x128xf32, #tpu.memory_space<vmem>>, vector<1x32x128xf32>
    %184 = vector.shape_cast %183 : vector<1x32x128xf32> to vector<32x128xf32>
    %cst_104 = arith.constant dense<0.000000e+00> : vector<8x128xf32>
    %185 = tpu.matmul %182, %184, %cst_104 {dimension_numbers = #tpu.dot_dimension_numbers<[1], [0], [0], [1], [0, 0, 1, 1], [], []>} : vector<8x32xf32>, vector<32x128xf32>, vector<8x128xf32> -> vector<8x128xf32>
    %186 = arith.addf %185, %161 : vector<8x128xf32>
    %187 = arith.negf %186 : vector<8x128xf32>
    %188 = math.exp %187 : vector<8x128xf32>
    %cst_105 = arith.constant 1.000000e+00 : f32
    %189 = vector.broadcast %cst_105 : f32 to vector<8x128xf32>
    %190 = arith.addf %189, %188 : vector<8x128xf32>
    %191 = arith.divf %189, %190 : vector<8x128xf32>
    %192 = vector.extract_strided_slice %191 {offsets = [0, 0], sizes = [8, 32], strides = [1, 1]} : vector<8x128xf32> to vector<8x32xf32>
    %193 = vector.extract_strided_slice %191 {offsets = [0, 32], sizes = [8, 32], strides = [1, 1]} : vector<8x128xf32> to vector<8x32xf32>
    %194 = vector.extract_strided_slice %191 {offsets = [0, 64], sizes = [8, 32], strides = [1, 1]} : vector<8x128xf32> to vector<8x32xf32>
    %cst_106 = arith.constant 2.000000e+00 : f32
    %195 = vector.broadcast %cst_106 : f32 to vector<8x32xf32>
    %196 = arith.mulf %195, %194 : vector<8x32xf32>
    %cst_107 = arith.constant 1.000000e+00 : f32
    %197 = vector.broadcast %cst_107 : f32 to vector<8x32xf32>
    %198 = arith.subf %196, %197 : vector<8x32xf32>
    %199 = vector.extract_strided_slice %191 {offsets = [0, 96], sizes = [8, 32], strides = [1, 1]} : vector<8x128xf32> to vector<8x32xf32>
    %200 = arith.mulf %193, %134 : vector<8x32xf32>
    %201 = arith.mulf %192, %198 : vector<8x32xf32>
    %202 = arith.addf %200, %201 : vector<8x32xf32>
    %203 = math.tanh %202 : vector<8x32xf32>
    %204 = arith.mulf %199, %203 : vector<8x32xf32>
    %c0_108 = arith.constant 0 : index
    %c0_109 = arith.constant 0 : index
    %205 = vector.load %arg4[%c0_108, %c0_109] : memref<32x128xf32, #tpu.memory_space<vmem>>, vector<32x128xf32>
    %cst_110 = arith.constant dense<0.000000e+00> : vector<8x128xf32>
    %206 = tpu.matmul %204, %205, %cst_110 {dimension_numbers = #tpu.dot_dimension_numbers<[1], [0], [0], [1], [0, 0, 1, 1], [], []>} : vector<8x32xf32>, vector<32x128xf32>, vector<8x128xf32> -> vector<8x128xf32>
    %c0_111 = arith.constant 0 : index
    %c0_112 = arith.constant 0 : index
    %207 = vector.load %arg5[%c0_111, %c0_112] : memref<8x128xf32, #tpu.memory_space<vmem>>, vector<8x128xf32>
    %208 = arith.addf %206, %207 : vector<8x128xf32>
    %c2_113 = arith.constant 2 : index
    %c0_114 = arith.constant 0 : index
    %c0_115 = arith.constant 0 : index
    %209 = vector.load %arg7[%c2_113, %c0_114, %c0_115] : memref<8x8x128xf32, #tpu.memory_space<vmem>>, vector<1x8x128xf32>
    %210 = vector.shape_cast %209 : vector<1x8x128xf32> to vector<8x128xf32>
    %211 = vector.shape_cast %208 : vector<8x128xf32> to vector<1x8x128xf32>
    tpu.vector_store %arg7[%c2_113, %c0_114, %c0_115], %211 {strides = array<i32>} : memref<8x8x128xf32, #tpu.memory_space<vmem>>, vector<1x8x128xf32>,
    %cst_116 = arith.constant dense<0xFF800000> : vector<8xf32>
    %212 = vector.multi_reduction <maximumf>, %208, %cst_116 [1] : vector<8x128xf32> to vector<8xf32>
    %213 = vector.shape_cast %212 : vector<8xf32> to vector<8x1xf32>
    %214 = vector.broadcast %213 : vector<8x1xf32> to vector<8x128xf32>
    %215 = arith.cmpf oeq, %208, %214 : vector<8x128xf32>
    %216 = arith.extui %215 : vector<8x128xi1> to vector<8x128xi32>
    %217 = arith.sitofp %216 : vector<8x128xi32> to vector<8x128xf32>
    %c0_117 = arith.constant 0 : index
    %c0_118 = arith.constant 0 : index
    %c0_119 = arith.constant 0 : index
    %218 = vector.load %arg2[%c0_117, %c0_118, %c0_119] : memref<3x32x128xf32, #tpu.memory_space<vmem>>, vector<1x32x128xf32>
    %219 = vector.shape_cast %218 : vector<1x32x128xf32> to vector<32x128xf32>
    %cst_120 = arith.constant dense<0.000000e+00> : vector<8x128xf32>
    %220 = tpu.matmul %182, %219, %cst_120 {dimension_numbers = #tpu.dot_dimension_numbers<[1], [0], [0], [1], [0, 0, 1, 1], [], []>} : vector<8x32xf32>, vector<32x128xf32>, vector<8x128xf32> -> vector<8x128xf32>
    %c0_121 = arith.constant 0 : index
    %c0_122 = arith.constant 0 : index
    %c0_123 = arith.constant 0 : index
    %221 = vector.load %arg3[%c0_121, %c0_122, %c0_123] : memref<2x8x128xf32, #tpu.memory_space<vmem>>, vector<1x8x128xf32>
    %222 = vector.shape_cast %221 : vector<1x8x128xf32> to vector<8x128xf32>
    %223 = arith.addf %220, %222 : vector<8x128xf32>
    %c2_124 = arith.constant 2 : index
    %c0_125 = arith.constant 0 : index
    %c0_126 = arith.constant 0 : index
    %224 = vector.load %arg2[%c2_124, %c0_125, %c0_126] : memref<3x32x128xf32, #tpu.memory_space<vmem>>, vector<1x32x128xf32>
    %225 = vector.shape_cast %224 : vector<1x32x128xf32> to vector<32x128xf32>
    %cst_127 = arith.constant dense<0.000000e+00> : vector<8x128xf32>
    %226 = tpu.matmul %204, %225, %cst_127 {dimension_numbers = #tpu.dot_dimension_numbers<[1], [0], [0], [1], [0, 0, 1, 1], [], []>} : vector<8x32xf32>, vector<32x128xf32>, vector<8x128xf32> -> vector<8x128xf32>
    %c1_128 = arith.constant 1 : index
    %c0_129 = arith.constant 0 : index
    %c0_130 = arith.constant 0 : index
    %227 = vector.load %arg3[%c1_128, %c0_129, %c0_130] : memref<2x8x128xf32, #tpu.memory_space<vmem>>, vector<1x8x128xf32>
    %228 = vector.shape_cast %227 : vector<1x8x128xf32> to vector<8x128xf32>
    %229 = arith.addf %226, %228 : vector<8x128xf32>
    %c0_131 = arith.constant 0 : index
    %c0_132 = arith.constant 0 : index
    %230 = vector.load %arg1[%c0_131, %c0_132] : memref<128x128xf32, #tpu.memory_space<vmem>>, vector<128x128xf32>
    %cst_133 = arith.constant dense<0.000000e+00> : vector<8x128xf32>
    %231 = tpu.matmul %217, %230, %cst_133 {dimension_numbers = #tpu.dot_dimension_numbers<[1], [0], [0], [1], [0, 0, 1, 1], [], []>} : vector<8x128xf32>, vector<128x128xf32>, vector<8x128xf32> -> vector<8x128xf32>
    %232 = arith.addf %231, %223 : vector<8x128xf32>
    %233 = arith.negf %232 : vector<8x128xf32>
    %234 = math.exp %233 : vector<8x128xf32>
    %cst_134 = arith.constant 1.000000e+00 : f32
    %235 = vector.broadcast %cst_134 : f32 to vector<8x128xf32>
    %236 = arith.addf %235, %234 : vector<8x128xf32>
    %237 = arith.divf %235, %236 : vector<8x128xf32>
    %238 = vector.extract_strided_slice %237 {offsets = [0, 0], sizes = [8, 32], strides = [1, 1]} : vector<8x128xf32> to vector<8x32xf32>
    %239 = vector.extract_strided_slice %237 {offsets = [0, 32], sizes = [8, 32], strides = [1, 1]} : vector<8x128xf32> to vector<8x32xf32>
    %240 = vector.extract_strided_slice %237 {offsets = [0, 64], sizes = [8, 32], strides = [1, 1]} : vector<8x128xf32> to vector<8x32xf32>
    %cst_135 = arith.constant 2.000000e+00 : f32
    %241 = vector.broadcast %cst_135 : f32 to vector<8x32xf32>
    %242 = arith.mulf %241, %240 : vector<8x32xf32>
    %cst_136 = arith.constant 1.000000e+00 : f32
    %243 = vector.broadcast %cst_136 : f32 to vector<8x32xf32>
    %244 = arith.subf %242, %243 : vector<8x32xf32>
    %245 = vector.extract_strided_slice %237 {offsets = [0, 96], sizes = [8, 32], strides = [1, 1]} : vector<8x128xf32> to vector<8x32xf32>
    %246 = arith.mulf %239, %180 : vector<8x32xf32>
    %247 = arith.mulf %238, %244 : vector<8x32xf32>
    %248 = arith.addf %246, %247 : vector<8x32xf32>
    %249 = math.tanh %248 : vector<8x32xf32>
    %250 = arith.mulf %245, %249 : vector<8x32xf32>
    %c1_137 = arith.constant 1 : index
    %c0_138 = arith.constant 0 : index
    %c0_139 = arith.constant 0 : index
    %251 = vector.load %arg2[%c1_137, %c0_138, %c0_139] : memref<3x32x128xf32, #tpu.memory_space<vmem>>, vector<1x32x128xf32>
    %252 = vector.shape_cast %251 : vector<1x32x128xf32> to vector<32x128xf32>
    %cst_140 = arith.constant dense<0.000000e+00> : vector<8x128xf32>
    %253 = tpu.matmul %250, %252, %cst_140 {dimension_numbers = #tpu.dot_dimension_numbers<[1], [0], [0], [1], [0, 0, 1, 1], [], []>} : vector<8x32xf32>, vector<32x128xf32>, vector<8x128xf32> -> vector<8x128xf32>
    %254 = arith.addf %253, %229 : vector<8x128xf32>
    %255 = arith.negf %254 : vector<8x128xf32>
    %256 = math.exp %255 : vector<8x128xf32>
    %cst_141 = arith.constant 1.000000e+00 : f32
    %257 = vector.broadcast %cst_141 : f32 to vector<8x128xf32>
    %258 = arith.addf %257, %256 : vector<8x128xf32>
    %259 = arith.divf %257, %258 : vector<8x128xf32>
    %260 = vector.extract_strided_slice %259 {offsets = [0, 0], sizes = [8, 32], strides = [1, 1]} : vector<8x128xf32> to vector<8x32xf32>
    %261 = vector.extract_strided_slice %259 {offsets = [0, 32], sizes = [8, 32], strides = [1, 1]} : vector<8x128xf32> to vector<8x32xf32>
    %262 = vector.extract_strided_slice %259 {offsets = [0, 64], sizes = [8, 32], strides = [1, 1]} : vector<8x128xf32> to vector<8x32xf32>
    %cst_142 = arith.constant 2.000000e+00 : f32
    %263 = vector.broadcast %cst_142 : f32 to vector<8x32xf32>
    %264 = arith.mulf %263, %262 : vector<8x32xf32>
    %cst_143 = arith.constant 1.000000e+00 : f32
    %265 = vector.broadcast %cst_143 : f32 to vector<8x32xf32>
    %266 = arith.subf %264, %265 : vector<8x32xf32>
    %267 = vector.extract_strided_slice %259 {offsets = [0, 96], sizes = [8, 32], strides = [1, 1]} : vector<8x128xf32> to vector<8x32xf32>
    %268 = arith.mulf %261, %202 : vector<8x32xf32>
    %269 = arith.mulf %260, %266 : vector<8x32xf32>
    %270 = arith.addf %268, %269 : vector<8x32xf32>
    %271 = math.tanh %270 : vector<8x32xf32>
    %272 = arith.mulf %267, %271 : vector<8x32xf32>
    %c0_144 = arith.constant 0 : index
    %c0_145 = arith.constant 0 : index
    %273 = vector.load %arg4[%c0_144, %c0_145] : memref<32x128xf32, #tpu.memory_space<vmem>>, vector<32x128xf32>
    %cst_146 = arith.constant dense<0.000000e+00> : vector<8x128xf32>
    %274 = tpu.matmul %272, %273, %cst_146 {dimension_numbers = #tpu.dot_dimension_numbers<[1], [0], [0], [1], [0, 0, 1, 1], [], []>} : vector<8x32xf32>, vector<32x128xf32>, vector<8x128xf32> -> vector<8x128xf32>
    %c0_147 = arith.constant 0 : index
    %c0_148 = arith.constant 0 : index
    %275 = vector.load %arg5[%c0_147, %c0_148] : memref<8x128xf32, #tpu.memory_space<vmem>>, vector<8x128xf32>
    %276 = arith.addf %274, %275 : vector<8x128xf32>
    %c3_149 = arith.constant 3 : index
    %c0_150 = arith.constant 0 : index
    %c0_151 = arith.constant 0 : index
    %277 = vector.load %arg7[%c3_149, %c0_150, %c0_151] : memref<8x8x128xf32, #tpu.memory_space<vmem>>, vector<1x8x128xf32>
    %278 = vector.shape_cast %277 : vector<1x8x128xf32> to vector<8x128xf32>
    %279 = vector.shape_cast %276 : vector<8x128xf32> to vector<1x8x128xf32>
    tpu.vector_store %arg7[%c3_149, %c0_150, %c0_151], %279 {strides = array<i32>} : memref<8x8x128xf32, #tpu.memory_space<vmem>>, vector<1x8x128xf32>,
    %cst_152 = arith.constant dense<0xFF800000> : vector<8xf32>
    %280 = vector.multi_reduction <maximumf>, %276, %cst_152 [1] : vector<8x128xf32> to vector<8xf32>
    %281 = vector.shape_cast %280 : vector<8xf32> to vector<8x1xf32>
    %282 = vector.broadcast %281 : vector<8x1xf32> to vector<8x128xf32>
    %283 = arith.cmpf oeq, %276, %282 : vector<8x128xf32>
    %284 = arith.extui %283 : vector<8x128xi1> to vector<8x128xi32>
    %285 = arith.sitofp %284 : vector<8x128xi32> to vector<8x128xf32>
    %c0_153 = arith.constant 0 : index
    %c0_154 = arith.constant 0 : index
    %c0_155 = arith.constant 0 : index
    %286 = vector.load %arg2[%c0_153, %c0_154, %c0_155] : memref<3x32x128xf32, #tpu.memory_space<vmem>>, vector<1x32x128xf32>
    %287 = vector.shape_cast %286 : vector<1x32x128xf32> to vector<32x128xf32>
    %cst_156 = arith.constant dense<0.000000e+00> : vector<8x128xf32>
    %288 = tpu.matmul %250, %287, %cst_156 {dimension_numbers = #tpu.dot_dimension_numbers<[1], [0], [0], [1], [0, 0, 1, 1], [], []>} : vector<8x32xf32>, vector<32x128xf32>, vector<8x128xf32> -> vector<8x128xf32>
    %c0_157 = arith.constant 0 : index
    %c0_158 = arith.constant 0 : index
    %c0_159 = arith.constant 0 : index
    %289 = vector.load %arg3[%c0_157, %c0_158, %c0_159] : memref<2x8x128xf32, #tpu.memory_space<vmem>>, vector<1x8x128xf32>
    %290 = vector.shape_cast %289 : vector<1x8x128xf32> to vector<8x128xf32>
    %291 = arith.addf %288, %290 : vector<8x128xf32>
    %c2_160 = arith.constant 2 : index
    %c0_161 = arith.constant 0 : index
    %c0_162 = arith.constant 0 : index
    %292 = vector.load %arg2[%c2_160, %c0_161, %c0_162] : memref<3x32x128xf32, #tpu.memory_space<vmem>>, vector<1x32x128xf32>
    %293 = vector.shape_cast %292 : vector<1x32x128xf32> to vector<32x128xf32>
    %cst_163 = arith.constant dense<0.000000e+00> : vector<8x128xf32>
    %294 = tpu.matmul %272, %293, %cst_163 {dimension_numbers = #tpu.dot_dimension_numbers<[1], [0], [0], [1], [0, 0, 1, 1], [], []>} : vector<8x32xf32>, vector<32x128xf32>, vector<8x128xf32> -> vector<8x128xf32>
    %c1_164 = arith.constant 1 : index
    %c0_165 = arith.constant 0 : index
    %c0_166 = arith.constant 0 : index
    %295 = vector.load %arg3[%c1_164, %c0_165, %c0_166] : memref<2x8x128xf32, #tpu.memory_space<vmem>>, vector<1x8x128xf32>
    %296 = vector.shape_cast %295 : vector<1x8x128xf32> to vector<8x128xf32>
    %297 = arith.addf %294, %296 : vector<8x128xf32>
    %c0_167 = arith.constant 0 : index
    %c0_168 = arith.constant 0 : index
    %298 = vector.load %arg1[%c0_167, %c0_168] : memref<128x128xf32, #tpu.memory_space<vmem>>, vector<128x128xf32>
    %cst_169 = arith.constant dense<0.000000e+00> : vector<8x128xf32>
    %299 = tpu.matmul %285, %298, %cst_169 {dimension_numbers = #tpu.dot_dimension_numbers<[1], [0], [0], [1], [0, 0, 1, 1], [], []>} : vector<8x128xf32>, vector<128x128xf32>, vector<8x128xf32> -> vector<8x128xf32>
    %300 = arith.addf %299, %291 : vector<8x128xf32>
    %301 = arith.negf %300 : vector<8x128xf32>
    %302 = math.exp %301 : vector<8x128xf32>
    %cst_170 = arith.constant 1.000000e+00 : f32
    %303 = vector.broadcast %cst_170 : f32 to vector<8x128xf32>
    %304 = arith.addf %303, %302 : vector<8x128xf32>
    %305 = arith.divf %303, %304 : vector<8x128xf32>
    %306 = vector.extract_strided_slice %305 {offsets = [0, 0], sizes = [8, 32], strides = [1, 1]} : vector<8x128xf32> to vector<8x32xf32>
    %307 = vector.extract_strided_slice %305 {offsets = [0, 32], sizes = [8, 32], strides = [1, 1]} : vector<8x128xf32> to vector<8x32xf32>
    %308 = vector.extract_strided_slice %305 {offsets = [0, 64], sizes = [8, 32], strides = [1, 1]} : vector<8x128xf32> to vector<8x32xf32>
    %cst_171 = arith.constant 2.000000e+00 : f32
    %309 = vector.broadcast %cst_171 : f32 to vector<8x32xf32>
    %310 = arith.mulf %309, %308 : vector<8x32xf32>
    %cst_172 = arith.constant 1.000000e+00 : f32
    %311 = vector.broadcast %cst_172 : f32 to vector<8x32xf32>
    %312 = arith.subf %310, %311 : vector<8x32xf32>
    %313 = vector.extract_strided_slice %305 {offsets = [0, 96], sizes = [8, 32], strides = [1, 1]} : vector<8x128xf32> to vector<8x32xf32>
    %314 = arith.mulf %307, %248 : vector<8x32xf32>
    %315 = arith.mulf %306, %312 : vector<8x32xf32>
    %316 = arith.addf %314, %315 : vector<8x32xf32>
    %317 = math.tanh %316 : vector<8x32xf32>
    %318 = arith.mulf %313, %317 : vector<8x32xf32>
    %c1_173 = arith.constant 1 : index
    %c0_174 = arith.constant 0 : index
    %c0_175 = arith.constant 0 : index
    %319 = vector.load %arg2[%c1_173, %c0_174, %c0_175] : memref<3x32x128xf32, #tpu.memory_space<vmem>>, vector<1x32x128xf32>
    %320 = vector.shape_cast %319 : vector<1x32x128xf32> to vector<32x128xf32>
    %cst_176 = arith.constant dense<0.000000e+00> : vector<8x128xf32>
    %321 = tpu.matmul %318, %320, %cst_176 {dimension_numbers = #tpu.dot_dimension_numbers<[1], [0], [0], [1], [0, 0, 1, 1], [], []>} : vector<8x32xf32>, vector<32x128xf32>, vector<8x128xf32> -> vector<8x128xf32>
    %322 = arith.addf %321, %297 : vector<8x128xf32>
    %323 = arith.negf %322 : vector<8x128xf32>
    %324 = math.exp %323 : vector<8x128xf32>
    %cst_177 = arith.constant 1.000000e+00 : f32
    %325 = vector.broadcast %cst_177 : f32 to vector<8x128xf32>
    %326 = arith.addf %325, %324 : vector<8x128xf32>
    %327 = arith.divf %325, %326 : vector<8x128xf32>
    %328 = vector.extract_strided_slice %327 {offsets = [0, 0], sizes = [8, 32], strides = [1, 1]} : vector<8x128xf32> to vector<8x32xf32>
    %329 = vector.extract_strided_slice %327 {offsets = [0, 32], sizes = [8, 32], strides = [1, 1]} : vector<8x128xf32> to vector<8x32xf32>
    %330 = vector.extract_strided_slice %327 {offsets = [0, 64], sizes = [8, 32], strides = [1, 1]} : vector<8x128xf32> to vector<8x32xf32>
    %cst_178 = arith.constant 2.000000e+00 : f32
    %331 = vector.broadcast %cst_178 : f32 to vector<8x32xf32>
    %332 = arith.mulf %331, %330 : vector<8x32xf32>
    %cst_179 = arith.constant 1.000000e+00 : f32
    %333 = vector.broadcast %cst_179 : f32 to vector<8x32xf32>
    %334 = arith.subf %332, %333 : vector<8x32xf32>
    %335 = vector.extract_strided_slice %327 {offsets = [0, 96], sizes = [8, 32], strides = [1, 1]} : vector<8x128xf32> to vector<8x32xf32>
    %336 = arith.mulf %329, %270 : vector<8x32xf32>
    %337 = arith.mulf %328, %334 : vector<8x32xf32>
    %338 = arith.addf %336, %337 : vector<8x32xf32>
    %339 = math.tanh %338 : vector<8x32xf32>
    %340 = arith.mulf %335, %339 : vector<8x32xf32>
    %c0_180 = arith.constant 0 : index
    %c0_181 = arith.constant 0 : index
    %341 = vector.load %arg4[%c0_180, %c0_181] : memref<32x128xf32, #tpu.memory_space<vmem>>, vector<32x128xf32>
    %cst_182 = arith.constant dense<0.000000e+00> : vector<8x128xf32>
    %342 = tpu.matmul %340, %341, %cst_182 {dimension_numbers = #tpu.dot_dimension_numbers<[1], [0], [0], [1], [0, 0, 1, 1], [], []>} : vector<8x32xf32>, vector<32x128xf32>, vector<8x128xf32> -> vector<8x128xf32>
    %c0_183 = arith.constant 0 : index
    %c0_184 = arith.constant 0 : index
    %343 = vector.load %arg5[%c0_183, %c0_184] : memref<8x128xf32, #tpu.memory_space<vmem>>, vector<8x128xf32>
    %344 = arith.addf %342, %343 : vector<8x128xf32>
    %c4 = arith.constant 4 : index
    %c0_185 = arith.constant 0 : index
    %c0_186 = arith.constant 0 : index
    %345 = vector.load %arg7[%c4, %c0_185, %c0_186] : memref<8x8x128xf32, #tpu.memory_space<vmem>>, vector<1x8x128xf32>
    %346 = vector.shape_cast %345 : vector<1x8x128xf32> to vector<8x128xf32>
    %347 = vector.shape_cast %344 : vector<8x128xf32> to vector<1x8x128xf32>
    tpu.vector_store %arg7[%c4, %c0_185, %c0_186], %347 {strides = array<i32>} : memref<8x8x128xf32, #tpu.memory_space<vmem>>, vector<1x8x128xf32>,
    %cst_187 = arith.constant dense<0xFF800000> : vector<8xf32>
    %348 = vector.multi_reduction <maximumf>, %344, %cst_187 [1] : vector<8x128xf32> to vector<8xf32>
    %349 = vector.shape_cast %348 : vector<8xf32> to vector<8x1xf32>
    %350 = vector.broadcast %349 : vector<8x1xf32> to vector<8x128xf32>
    %351 = arith.cmpf oeq, %344, %350 : vector<8x128xf32>
    %352 = arith.extui %351 : vector<8x128xi1> to vector<8x128xi32>
    %353 = arith.sitofp %352 : vector<8x128xi32> to vector<8x128xf32>
    %c0_188 = arith.constant 0 : index
    %c0_189 = arith.constant 0 : index
    %c0_190 = arith.constant 0 : index
    %354 = vector.load %arg2[%c0_188, %c0_189, %c0_190] : memref<3x32x128xf32, #tpu.memory_space<vmem>>, vector<1x32x128xf32>
    %355 = vector.shape_cast %354 : vector<1x32x128xf32> to vector<32x128xf32>
    %cst_191 = arith.constant dense<0.000000e+00> : vector<8x128xf32>
    %356 = tpu.matmul %318, %355, %cst_191 {dimension_numbers = #tpu.dot_dimension_numbers<[1], [0], [0], [1], [0, 0, 1, 1], [], []>} : vector<8x32xf32>, vector<32x128xf32>, vector<8x128xf32> -> vector<8x128xf32>
    %c0_192 = arith.constant 0 : index
    %c0_193 = arith.constant 0 : index
    %c0_194 = arith.constant 0 : index
    %357 = vector.load %arg3[%c0_192, %c0_193, %c0_194] : memref<2x8x128xf32, #tpu.memory_space<vmem>>, vector<1x8x128xf32>
    %358 = vector.shape_cast %357 : vector<1x8x128xf32> to vector<8x128xf32>
    %359 = arith.addf %356, %358 : vector<8x128xf32>
    %c2_195 = arith.constant 2 : index
    %c0_196 = arith.constant 0 : index
    %c0_197 = arith.constant 0 : index
    %360 = vector.load %arg2[%c2_195, %c0_196, %c0_197] : memref<3x32x128xf32, #tpu.memory_space<vmem>>, vector<1x32x128xf32>
    %361 = vector.shape_cast %360 : vector<1x32x128xf32> to vector<32x128xf32>
    %cst_198 = arith.constant dense<0.000000e+00> : vector<8x128xf32>
    %362 = tpu.matmul %340, %361, %cst_198 {dimension_numbers = #tpu.dot_dimension_numbers<[1], [0], [0], [1], [0, 0, 1, 1], [], []>} : vector<8x32xf32>, vector<32x128xf32>, vector<8x128xf32> -> vector<8x128xf32>
    %c1_199 = arith.constant 1 : index
    %c0_200 = arith.constant 0 : index
    %c0_201 = arith.constant 0 : index
    %363 = vector.load %arg3[%c1_199, %c0_200, %c0_201] : memref<2x8x128xf32, #tpu.memory_space<vmem>>, vector<1x8x128xf32>
    %364 = vector.shape_cast %363 : vector<1x8x128xf32> to vector<8x128xf32>
    %365 = arith.addf %362, %364 : vector<8x128xf32>
    %c0_202 = arith.constant 0 : index
    %c0_203 = arith.constant 0 : index
    %366 = vector.load %arg1[%c0_202, %c0_203] : memref<128x128xf32, #tpu.memory_space<vmem>>, vector<128x128xf32>
    %cst_204 = arith.constant dense<0.000000e+00> : vector<8x128xf32>
    %367 = tpu.matmul %353, %366, %cst_204 {dimension_numbers = #tpu.dot_dimension_numbers<[1], [0], [0], [1], [0, 0, 1, 1], [], []>} : vector<8x128xf32>, vector<128x128xf32>, vector<8x128xf32> -> vector<8x128xf32>
    %368 = arith.addf %367, %359 : vector<8x128xf32>
    %369 = arith.negf %368 : vector<8x128xf32>
    %370 = math.exp %369 : vector<8x128xf32>
    %cst_205 = arith.constant 1.000000e+00 : f32
    %371 = vector.broadcast %cst_205 : f32 to vector<8x128xf32>
    %372 = arith.addf %371, %370 : vector<8x128xf32>
    %373 = arith.divf %371, %372 : vector<8x128xf32>
    %374 = vector.extract_strided_slice %373 {offsets = [0, 0], sizes = [8, 32], strides = [1, 1]} : vector<8x128xf32> to vector<8x32xf32>
    %375 = vector.extract_strided_slice %373 {offsets = [0, 32], sizes = [8, 32], strides = [1, 1]} : vector<8x128xf32> to vector<8x32xf32>
    %376 = vector.extract_strided_slice %373 {offsets = [0, 64], sizes = [8, 32], strides = [1, 1]} : vector<8x128xf32> to vector<8x32xf32>
    %cst_206 = arith.constant 2.000000e+00 : f32
    %377 = vector.broadcast %cst_206 : f32 to vector<8x32xf32>
    %378 = arith.mulf %377, %376 : vector<8x32xf32>
    %cst_207 = arith.constant 1.000000e+00 : f32
    %379 = vector.broadcast %cst_207 : f32 to vector<8x32xf32>
    %380 = arith.subf %378, %379 : vector<8x32xf32>
    %381 = vector.extract_strided_slice %373 {offsets = [0, 96], sizes = [8, 32], strides = [1, 1]} : vector<8x128xf32> to vector<8x32xf32>
    %382 = arith.mulf %375, %316 : vector<8x32xf32>
    %383 = arith.mulf %374, %380 : vector<8x32xf32>
    %384 = arith.addf %382, %383 : vector<8x32xf32>
    %385 = math.tanh %384 : vector<8x32xf32>
    %386 = arith.mulf %381, %385 : vector<8x32xf32>
    %c1_208 = arith.constant 1 : index
    %c0_209 = arith.constant 0 : index
    %c0_210 = arith.constant 0 : index
    %387 = vector.load %arg2[%c1_208, %c0_209, %c0_210] : memref<3x32x128xf32, #tpu.memory_space<vmem>>, vector<1x32x128xf32>
    %388 = vector.shape_cast %387 : vector<1x32x128xf32> to vector<32x128xf32>
    %cst_211 = arith.constant dense<0.000000e+00> : vector<8x128xf32>
    %389 = tpu.matmul %386, %388, %cst_211 {dimension_numbers = #tpu.dot_dimension_numbers<[1], [0], [0], [1], [0, 0, 1, 1], [], []>} : vector<8x32xf32>, vector<32x128xf32>, vector<8x128xf32> -> vector<8x128xf32>
    %390 = arith.addf %389, %365 : vector<8x128xf32>
    %391 = arith.negf %390 : vector<8x128xf32>
    %392 = math.exp %391 : vector<8x128xf32>
    %cst_212 = arith.constant 1.000000e+00 : f32
    %393 = vector.broadcast %cst_212 : f32 to vector<8x128xf32>
    %394 = arith.addf %393, %392 : vector<8x128xf32>
    %395 = arith.divf %393, %394 : vector<8x128xf32>
    %396 = vector.extract_strided_slice %395 {offsets = [0, 0], sizes = [8, 32], strides = [1, 1]} : vector<8x128xf32> to vector<8x32xf32>
    %397 = vector.extract_strided_slice %395 {offsets = [0, 32], sizes = [8, 32], strides = [1, 1]} : vector<8x128xf32> to vector<8x32xf32>
    %398 = vector.extract_strided_slice %395 {offsets = [0, 64], sizes = [8, 32], strides = [1, 1]} : vector<8x128xf32> to vector<8x32xf32>
    %cst_213 = arith.constant 2.000000e+00 : f32
    %399 = vector.broadcast %cst_213 : f32 to vector<8x32xf32>
    %400 = arith.mulf %399, %398 : vector<8x32xf32>
    %cst_214 = arith.constant 1.000000e+00 : f32
    %401 = vector.broadcast %cst_214 : f32 to vector<8x32xf32>
    %402 = arith.subf %400, %401 : vector<8x32xf32>
    %403 = vector.extract_strided_slice %395 {offsets = [0, 96], sizes = [8, 32], strides = [1, 1]} : vector<8x128xf32> to vector<8x32xf32>
    %404 = arith.mulf %397, %338 : vector<8x32xf32>
    %405 = arith.mulf %396, %402 : vector<8x32xf32>
    %406 = arith.addf %404, %405 : vector<8x32xf32>
    %407 = math.tanh %406 : vector<8x32xf32>
    %408 = arith.mulf %403, %407 : vector<8x32xf32>
    %c0_215 = arith.constant 0 : index
    %c0_216 = arith.constant 0 : index
    %409 = vector.load %arg4[%c0_215, %c0_216] : memref<32x128xf32, #tpu.memory_space<vmem>>, vector<32x128xf32>
    %cst_217 = arith.constant dense<0.000000e+00> : vector<8x128xf32>
    %410 = tpu.matmul %408, %409, %cst_217 {dimension_numbers = #tpu.dot_dimension_numbers<[1], [0], [0], [1], [0, 0, 1, 1], [], []>} : vector<8x32xf32>, vector<32x128xf32>, vector<8x128xf32> -> vector<8x128xf32>
    %c0_218 = arith.constant 0 : index
    %c0_219 = arith.constant 0 : index
    %411 = vector.load %arg5[%c0_218, %c0_219] : memref<8x128xf32, #tpu.memory_space<vmem>>, vector<8x128xf32>
    %412 = arith.addf %410, %411 : vector<8x128xf32>
    %c5 = arith.constant 5 : index
    %c0_220 = arith.constant 0 : index
    %c0_221 = arith.constant 0 : index
    %413 = vector.load %arg7[%c5, %c0_220, %c0_221] : memref<8x8x128xf32, #tpu.memory_space<vmem>>, vector<1x8x128xf32>
    %414 = vector.shape_cast %413 : vector<1x8x128xf32> to vector<8x128xf32>
    %415 = vector.shape_cast %412 : vector<8x128xf32> to vector<1x8x128xf32>
    tpu.vector_store %arg7[%c5, %c0_220, %c0_221], %415 {strides = array<i32>} : memref<8x8x128xf32, #tpu.memory_space<vmem>>, vector<1x8x128xf32>,
    %cst_222 = arith.constant dense<0xFF800000> : vector<8xf32>
    %416 = vector.multi_reduction <maximumf>, %412, %cst_222 [1] : vector<8x128xf32> to vector<8xf32>
    %417 = vector.shape_cast %416 : vector<8xf32> to vector<8x1xf32>
    %418 = vector.broadcast %417 : vector<8x1xf32> to vector<8x128xf32>
    %419 = arith.cmpf oeq, %412, %418 : vector<8x128xf32>
    %420 = arith.extui %419 : vector<8x128xi1> to vector<8x128xi32>
    %421 = arith.sitofp %420 : vector<8x128xi32> to vector<8x128xf32>
    %c0_223 = arith.constant 0 : index
    %c0_224 = arith.constant 0 : index
    %c0_225 = arith.constant 0 : index
    %422 = vector.load %arg2[%c0_223, %c0_224, %c0_225] : memref<3x32x128xf32, #tpu.memory_space<vmem>>, vector<1x32x128xf32>
    %423 = vector.shape_cast %422 : vector<1x32x128xf32> to vector<32x128xf32>
    %cst_226 = arith.constant dense<0.000000e+00> : vector<8x128xf32>
    %424 = tpu.matmul %386, %423, %cst_226 {dimension_numbers = #tpu.dot_dimension_numbers<[1], [0], [0], [1], [0, 0, 1, 1], [], []>} : vector<8x32xf32>, vector<32x128xf32>, vector<8x128xf32> -> vector<8x128xf32>
    %c0_227 = arith.constant 0 : index
    %c0_228 = arith.constant 0 : index
    %c0_229 = arith.constant 0 : index
    %425 = vector.load %arg3[%c0_227, %c0_228, %c0_229] : memref<2x8x128xf32, #tpu.memory_space<vmem>>, vector<1x8x128xf32>
    %426 = vector.shape_cast %425 : vector<1x8x128xf32> to vector<8x128xf32>
    %427 = arith.addf %424, %426 : vector<8x128xf32>
    %c2_230 = arith.constant 2 : index
    %c0_231 = arith.constant 0 : index
    %c0_232 = arith.constant 0 : index
    %428 = vector.load %arg2[%c2_230, %c0_231, %c0_232] : memref<3x32x128xf32, #tpu.memory_space<vmem>>, vector<1x32x128xf32>
    %429 = vector.shape_cast %428 : vector<1x32x128xf32> to vector<32x128xf32>
    %cst_233 = arith.constant dense<0.000000e+00> : vector<8x128xf32>
    %430 = tpu.matmul %408, %429, %cst_233 {dimension_numbers = #tpu.dot_dimension_numbers<[1], [0], [0], [1], [0, 0, 1, 1], [], []>} : vector<8x32xf32>, vector<32x128xf32>, vector<8x128xf32> -> vector<8x128xf32>
    %c1_234 = arith.constant 1 : index
    %c0_235 = arith.constant 0 : index
    %c0_236 = arith.constant 0 : index
    %431 = vector.load %arg3[%c1_234, %c0_235, %c0_236] : memref<2x8x128xf32, #tpu.memory_space<vmem>>, vector<1x8x128xf32>
    %432 = vector.shape_cast %431 : vector<1x8x128xf32> to vector<8x128xf32>
    %433 = arith.addf %430, %432 : vector<8x128xf32>
    %c0_237 = arith.constant 0 : index
    %c0_238 = arith.constant 0 : index
    %434 = vector.load %arg1[%c0_237, %c0_238] : memref<128x128xf32, #tpu.memory_space<vmem>>, vector<128x128xf32>
    %cst_239 = arith.constant dense<0.000000e+00> : vector<8x128xf32>
    %435 = tpu.matmul %421, %434, %cst_239 {dimension_numbers = #tpu.dot_dimension_numbers<[1], [0], [0], [1], [0, 0, 1, 1], [], []>} : vector<8x128xf32>, vector<128x128xf32>, vector<8x128xf32> -> vector<8x128xf32>
    %436 = arith.addf %435, %427 : vector<8x128xf32>
    %437 = arith.negf %436 : vector<8x128xf32>
    %438 = math.exp %437 : vector<8x128xf32>
    %cst_240 = arith.constant 1.000000e+00 : f32
    %439 = vector.broadcast %cst_240 : f32 to vector<8x128xf32>
    %440 = arith.addf %439, %438 : vector<8x128xf32>
    %441 = arith.divf %439, %440 : vector<8x128xf32>
    %442 = vector.extract_strided_slice %441 {offsets = [0, 0], sizes = [8, 32], strides = [1, 1]} : vector<8x128xf32> to vector<8x32xf32>
    %443 = vector.extract_strided_slice %441 {offsets = [0, 32], sizes = [8, 32], strides = [1, 1]} : vector<8x128xf32> to vector<8x32xf32>
    %444 = vector.extract_strided_slice %441 {offsets = [0, 64], sizes = [8, 32], strides = [1, 1]} : vector<8x128xf32> to vector<8x32xf32>
    %cst_241 = arith.constant 2.000000e+00 : f32
    %445 = vector.broadcast %cst_241 : f32 to vector<8x32xf32>
    %446 = arith.mulf %445, %444 : vector<8x32xf32>
    %cst_242 = arith.constant 1.000000e+00 : f32
    %447 = vector.broadcast %cst_242 : f32 to vector<8x32xf32>
    %448 = arith.subf %446, %447 : vector<8x32xf32>
    %449 = vector.extract_strided_slice %441 {offsets = [0, 96], sizes = [8, 32], strides = [1, 1]} : vector<8x128xf32> to vector<8x32xf32>
    %450 = arith.mulf %443, %384 : vector<8x32xf32>
    %451 = arith.mulf %442, %448 : vector<8x32xf32>
    %452 = arith.addf %450, %451 : vector<8x32xf32>
    %453 = math.tanh %452 : vector<8x32xf32>
    %454 = arith.mulf %449, %453 : vector<8x32xf32>
    %c1_243 = arith.constant 1 : index
    %c0_244 = arith.constant 0 : index
    %c0_245 = arith.constant 0 : index
    %455 = vector.load %arg2[%c1_243, %c0_244, %c0_245] : memref<3x32x128xf32, #tpu.memory_space<vmem>>, vector<1x32x128xf32>
    %456 = vector.shape_cast %455 : vector<1x32x128xf32> to vector<32x128xf32>
    %cst_246 = arith.constant dense<0.000000e+00> : vector<8x128xf32>
    %457 = tpu.matmul %454, %456, %cst_246 {dimension_numbers = #tpu.dot_dimension_numbers<[1], [0], [0], [1], [0, 0, 1, 1], [], []>} : vector<8x32xf32>, vector<32x128xf32>, vector<8x128xf32> -> vector<8x128xf32>
    %458 = arith.addf %457, %433 : vector<8x128xf32>
    %459 = arith.negf %458 : vector<8x128xf32>
    %460 = math.exp %459 : vector<8x128xf32>
    %cst_247 = arith.constant 1.000000e+00 : f32
    %461 = vector.broadcast %cst_247 : f32 to vector<8x128xf32>
    %462 = arith.addf %461, %460 : vector<8x128xf32>
    %463 = arith.divf %461, %462 : vector<8x128xf32>
    %464 = vector.extract_strided_slice %463 {offsets = [0, 0], sizes = [8, 32], strides = [1, 1]} : vector<8x128xf32> to vector<8x32xf32>
    %465 = vector.extract_strided_slice %463 {offsets = [0, 32], sizes = [8, 32], strides = [1, 1]} : vector<8x128xf32> to vector<8x32xf32>
    %466 = vector.extract_strided_slice %463 {offsets = [0, 64], sizes = [8, 32], strides = [1, 1]} : vector<8x128xf32> to vector<8x32xf32>
    %cst_248 = arith.constant 2.000000e+00 : f32
    %467 = vector.broadcast %cst_248 : f32 to vector<8x32xf32>
    %468 = arith.mulf %467, %466 : vector<8x32xf32>
    %cst_249 = arith.constant 1.000000e+00 : f32
    %469 = vector.broadcast %cst_249 : f32 to vector<8x32xf32>
    %470 = arith.subf %468, %469 : vector<8x32xf32>
    %471 = vector.extract_strided_slice %463 {offsets = [0, 96], sizes = [8, 32], strides = [1, 1]} : vector<8x128xf32> to vector<8x32xf32>
    %472 = arith.mulf %465, %406 : vector<8x32xf32>
    %473 = arith.mulf %464, %470 : vector<8x32xf32>
    %474 = arith.addf %472, %473 : vector<8x32xf32>
    %475 = math.tanh %474 : vector<8x32xf32>
    %476 = arith.mulf %471, %475 : vector<8x32xf32>
    %c0_250 = arith.constant 0 : index
    %c0_251 = arith.constant 0 : index
    %477 = vector.load %arg4[%c0_250, %c0_251] : memref<32x128xf32, #tpu.memory_space<vmem>>, vector<32x128xf32>
    %cst_252 = arith.constant dense<0.000000e+00> : vector<8x128xf32>
    %478 = tpu.matmul %476, %477, %cst_252 {dimension_numbers = #tpu.dot_dimension_numbers<[1], [0], [0], [1], [0, 0, 1, 1], [], []>} : vector<8x32xf32>, vector<32x128xf32>, vector<8x128xf32> -> vector<8x128xf32>
    %c0_253 = arith.constant 0 : index
    %c0_254 = arith.constant 0 : index
    %479 = vector.load %arg5[%c0_253, %c0_254] : memref<8x128xf32, #tpu.memory_space<vmem>>, vector<8x128xf32>
    %480 = arith.addf %478, %479 : vector<8x128xf32>
    %c6 = arith.constant 6 : index
    %c0_255 = arith.constant 0 : index
    %c0_256 = arith.constant 0 : index
    %481 = vector.load %arg7[%c6, %c0_255, %c0_256] : memref<8x8x128xf32, #tpu.memory_space<vmem>>, vector<1x8x128xf32>
    %482 = vector.shape_cast %481 : vector<1x8x128xf32> to vector<8x128xf32>
    %483 = vector.shape_cast %480 : vector<8x128xf32> to vector<1x8x128xf32>
    tpu.vector_store %arg7[%c6, %c0_255, %c0_256], %483 {strides = array<i32>} : memref<8x8x128xf32, #tpu.memory_space<vmem>>, vector<1x8x128xf32>,
    %cst_257 = arith.constant dense<0xFF800000> : vector<8xf32>
    %484 = vector.multi_reduction <maximumf>, %480, %cst_257 [1] : vector<8x128xf32> to vector<8xf32>
    %485 = vector.shape_cast %484 : vector<8xf32> to vector<8x1xf32>
    %486 = vector.broadcast %485 : vector<8x1xf32> to vector<8x128xf32>
    %487 = arith.cmpf oeq, %480, %486 : vector<8x128xf32>
    %488 = arith.extui %487 : vector<8x128xi1> to vector<8x128xi32>
    %489 = arith.sitofp %488 : vector<8x128xi32> to vector<8x128xf32>
    %c0_258 = arith.constant 0 : index
    %c0_259 = arith.constant 0 : index
    %c0_260 = arith.constant 0 : index
    %490 = vector.load %arg2[%c0_258, %c0_259, %c0_260] : memref<3x32x128xf32, #tpu.memory_space<vmem>>, vector<1x32x128xf32>
    %491 = vector.shape_cast %490 : vector<1x32x128xf32> to vector<32x128xf32>
    %cst_261 = arith.constant dense<0.000000e+00> : vector<8x128xf32>
    %492 = tpu.matmul %454, %491, %cst_261 {dimension_numbers = #tpu.dot_dimension_numbers<[1], [0], [0], [1], [0, 0, 1, 1], [], []>} : vector<8x32xf32>, vector<32x128xf32>, vector<8x128xf32> -> vector<8x128xf32>
    %c0_262 = arith.constant 0 : index
    %c0_263 = arith.constant 0 : index
    %c0_264 = arith.constant 0 : index
    %493 = vector.load %arg3[%c0_262, %c0_263, %c0_264] : memref<2x8x128xf32, #tpu.memory_space<vmem>>, vector<1x8x128xf32>
    %494 = vector.shape_cast %493 : vector<1x8x128xf32> to vector<8x128xf32>
    %495 = arith.addf %492, %494 : vector<8x128xf32>
    %c2_265 = arith.constant 2 : index
    %c0_266 = arith.constant 0 : index
    %c0_267 = arith.constant 0 : index
    %496 = vector.load %arg2[%c2_265, %c0_266, %c0_267] : memref<3x32x128xf32, #tpu.memory_space<vmem>>, vector<1x32x128xf32>
    %497 = vector.shape_cast %496 : vector<1x32x128xf32> to vector<32x128xf32>
    %cst_268 = arith.constant dense<0.000000e+00> : vector<8x128xf32>
    %498 = tpu.matmul %476, %497, %cst_268 {dimension_numbers = #tpu.dot_dimension_numbers<[1], [0], [0], [1], [0, 0, 1, 1], [], []>} : vector<8x32xf32>, vector<32x128xf32>, vector<8x128xf32> -> vector<8x128xf32>
    %c1_269 = arith.constant 1 : index
    %c0_270 = arith.constant 0 : index
    %c0_271 = arith.constant 0 : index
    %499 = vector.load %arg3[%c1_269, %c0_270, %c0_271] : memref<2x8x128xf32, #tpu.memory_space<vmem>>, vector<1x8x128xf32>
    %500 = vector.shape_cast %499 : vector<1x8x128xf32> to vector<8x128xf32>
    %501 = arith.addf %498, %500 : vector<8x128xf32>
    %c0_272 = arith.constant 0 : index
    %c0_273 = arith.constant 0 : index
    %502 = vector.load %arg1[%c0_272, %c0_273] : memref<128x128xf32, #tpu.memory_space<vmem>>, vector<128x128xf32>
    %cst_274 = arith.constant dense<0.000000e+00> : vector<8x128xf32>
    %503 = tpu.matmul %489, %502, %cst_274 {dimension_numbers = #tpu.dot_dimension_numbers<[1], [0], [0], [1], [0, 0, 1, 1], [], []>} : vector<8x128xf32>, vector<128x128xf32>, vector<8x128xf32> -> vector<8x128xf32>
    %504 = arith.addf %503, %495 : vector<8x128xf32>
    %505 = arith.negf %504 : vector<8x128xf32>
    %506 = math.exp %505 : vector<8x128xf32>
    %cst_275 = arith.constant 1.000000e+00 : f32
    %507 = vector.broadcast %cst_275 : f32 to vector<8x128xf32>
    %508 = arith.addf %507, %506 : vector<8x128xf32>
    %509 = arith.divf %507, %508 : vector<8x128xf32>
    %510 = vector.extract_strided_slice %509 {offsets = [0, 0], sizes = [8, 32], strides = [1, 1]} : vector<8x128xf32> to vector<8x32xf32>
    %511 = vector.extract_strided_slice %509 {offsets = [0, 32], sizes = [8, 32], strides = [1, 1]} : vector<8x128xf32> to vector<8x32xf32>
    %512 = vector.extract_strided_slice %509 {offsets = [0, 64], sizes = [8, 32], strides = [1, 1]} : vector<8x128xf32> to vector<8x32xf32>
    %cst_276 = arith.constant 2.000000e+00 : f32
    %513 = vector.broadcast %cst_276 : f32 to vector<8x32xf32>
    %514 = arith.mulf %513, %512 : vector<8x32xf32>
    %cst_277 = arith.constant 1.000000e+00 : f32
    %515 = vector.broadcast %cst_277 : f32 to vector<8x32xf32>
    %516 = arith.subf %514, %515 : vector<8x32xf32>
    %517 = vector.extract_strided_slice %509 {offsets = [0, 96], sizes = [8, 32], strides = [1, 1]} : vector<8x128xf32> to vector<8x32xf32>
    %518 = arith.mulf %511, %452 : vector<8x32xf32>
    %519 = arith.mulf %510, %516 : vector<8x32xf32>
    %520 = arith.addf %518, %519 : vector<8x32xf32>
    %521 = math.tanh %520 : vector<8x32xf32>
    %522 = arith.mulf %517, %521 : vector<8x32xf32>
    %c1_278 = arith.constant 1 : index
    %c0_279 = arith.constant 0 : index
    %c0_280 = arith.constant 0 : index
    %523 = vector.load %arg2[%c1_278, %c0_279, %c0_280] : memref<3x32x128xf32, #tpu.memory_space<vmem>>, vector<1x32x128xf32>
    %524 = vector.shape_cast %523 : vector<1x32x128xf32> to vector<32x128xf32>
    %cst_281 = arith.constant dense<0.000000e+00> : vector<8x128xf32>
    %525 = tpu.matmul %522, %524, %cst_281 {dimension_numbers = #tpu.dot_dimension_numbers<[1], [0], [0], [1], [0, 0, 1, 1], [], []>} : vector<8x32xf32>, vector<32x128xf32>, vector<8x128xf32> -> vector<8x128xf32>
    %526 = arith.addf %525, %501 : vector<8x128xf32>
    %527 = arith.negf %526 : vector<8x128xf32>
    %528 = math.exp %527 : vector<8x128xf32>
    %cst_282 = arith.constant 1.000000e+00 : f32
    %529 = vector.broadcast %cst_282 : f32 to vector<8x128xf32>
    %530 = arith.addf %529, %528 : vector<8x128xf32>
    %531 = arith.divf %529, %530 : vector<8x128xf32>
    %532 = vector.extract_strided_slice %531 {offsets = [0, 0], sizes = [8, 32], strides = [1, 1]} : vector<8x128xf32> to vector<8x32xf32>
    %533 = vector.extract_strided_slice %531 {offsets = [0, 32], sizes = [8, 32], strides = [1, 1]} : vector<8x128xf32> to vector<8x32xf32>
    %534 = vector.extract_strided_slice %531 {offsets = [0, 64], sizes = [8, 32], strides = [1, 1]} : vector<8x128xf32> to vector<8x32xf32>
    %cst_283 = arith.constant 2.000000e+00 : f32
    %535 = vector.broadcast %cst_283 : f32 to vector<8x32xf32>
    %536 = arith.mulf %535, %534 : vector<8x32xf32>
    %cst_284 = arith.constant 1.000000e+00 : f32
    %537 = vector.broadcast %cst_284 : f32 to vector<8x32xf32>
    %538 = arith.subf %536, %537 : vector<8x32xf32>
    %539 = vector.extract_strided_slice %531 {offsets = [0, 96], sizes = [8, 32], strides = [1, 1]} : vector<8x128xf32> to vector<8x32xf32>
    %540 = arith.mulf %533, %474 : vector<8x32xf32>
    %541 = arith.mulf %532, %538 : vector<8x32xf32>
    %542 = arith.addf %540, %541 : vector<8x32xf32>
    %543 = math.tanh %542 : vector<8x32xf32>
    %544 = arith.mulf %539, %543 : vector<8x32xf32>
    %c0_285 = arith.constant 0 : index
    %c0_286 = arith.constant 0 : index
    %545 = vector.load %arg4[%c0_285, %c0_286] : memref<32x128xf32, #tpu.memory_space<vmem>>, vector<32x128xf32>
    %cst_287 = arith.constant dense<0.000000e+00> : vector<8x128xf32>
    %546 = tpu.matmul %544, %545, %cst_287 {dimension_numbers = #tpu.dot_dimension_numbers<[1], [0], [0], [1], [0, 0, 1, 1], [], []>} : vector<8x32xf32>, vector<32x128xf32>, vector<8x128xf32> -> vector<8x128xf32>
    %c0_288 = arith.constant 0 : index
    %c0_289 = arith.constant 0 : index
    %547 = vector.load %arg5[%c0_288, %c0_289] : memref<8x128xf32, #tpu.memory_space<vmem>>, vector<8x128xf32>
    %548 = arith.addf %546, %547 : vector<8x128xf32>
    %c7 = arith.constant 7 : index
    %c0_290 = arith.constant 0 : index
    %c0_291 = arith.constant 0 : index
    %549 = vector.load %arg7[%c7, %c0_290, %c0_291] : memref<8x8x128xf32, #tpu.memory_space<vmem>>, vector<1x8x128xf32>
    %550 = vector.shape_cast %549 : vector<1x8x128xf32> to vector<8x128xf32>
    %551 = vector.shape_cast %548 : vector<8x128xf32> to vector<1x8x128xf32>
    tpu.vector_store %arg7[%c7, %c0_290, %c0_291], %551 {strides = array<i32>} : memref<8x8x128xf32, #tpu.memory_space<vmem>>, vector<1x8x128xf32>,
    %c0_292 = arith.constant 0 : index
    %c0_293 = arith.constant 0 : index
    %c0_294 = arith.constant 0 : index
    %552 = vector.load %arg8[%c0_292, %c0_293, %c0_294] : memref<4x8x32xf32, #tpu.memory_space<vmem>>, vector<1x8x32xf32>
    %553 = vector.shape_cast %552 : vector<1x8x32xf32> to vector<8x32xf32>
    %554 = vector.shape_cast %522 : vector<8x32xf32> to vector<1x8x32xf32>
    tpu.vector_store %arg8[%c0_292, %c0_293, %c0_294], %554 {strides = array<i32>} : memref<4x8x32xf32, #tpu.memory_space<vmem>>, vector<1x8x32xf32>,
    %c2_295 = arith.constant 2 : index
    %c0_296 = arith.constant 0 : index
    %c0_297 = arith.constant 0 : index
    %555 = vector.load %arg8[%c2_295, %c0_296, %c0_297] : memref<4x8x32xf32, #tpu.memory_space<vmem>>, vector<1x8x32xf32>
    %556 = vector.shape_cast %555 : vector<1x8x32xf32> to vector<8x32xf32>
    %557 = vector.shape_cast %520 : vector<8x32xf32> to vector<1x8x32xf32>
    tpu.vector_store %arg8[%c2_295, %c0_296, %c0_297], %557 {strides = array<i32>} : memref<4x8x32xf32, #tpu.memory_space<vmem>>, vector<1x8x32xf32>,
    %c1_298 = arith.constant 1 : index
    %c0_299 = arith.constant 0 : index
    %c0_300 = arith.constant 0 : index
    %558 = vector.load %arg8[%c1_298, %c0_299, %c0_300] : memref<4x8x32xf32, #tpu.memory_space<vmem>>, vector<1x8x32xf32>
    %559 = vector.shape_cast %558 : vector<1x8x32xf32> to vector<8x32xf32>
    %560 = vector.shape_cast %544 : vector<8x32xf32> to vector<1x8x32xf32>
    tpu.vector_store %arg8[%c1_298, %c0_299, %c0_300], %560 {strides = array<i32>} : memref<4x8x32xf32, #tpu.memory_space<vmem>>, vector<1x8x32xf32>,
    %c3_301 = arith.constant 3 : index
    %c0_302 = arith.constant 0 : index
    %c0_303 = arith.constant 0 : index
    %561 = vector.load %arg8[%c3_301, %c0_302, %c0_303] : memref<4x8x32xf32, #tpu.memory_space<vmem>>, vector<1x8x32xf32>
    %562 = vector.shape_cast %561 : vector<1x8x32xf32> to vector<8x32xf32>
    %563 = vector.shape_cast %542 : vector<8x32xf32> to vector<1x8x32xf32>
    tpu.vector_store %arg8[%c3_301, %c0_302, %c0_303], %563 {strides = array<i32>} : memref<4x8x32xf32, #tpu.memory_space<vmem>>, vector<1x8x32xf32>,
    return
  }
}

</mosaic_0001>

<bundles_post_ra>
// kernel: tpu_custom_call.1
= control target key start
LH: loop header
LB: loop body
LE: loop exit
PB: predicated region body
PF: predicated region fallthrough
CT: control target
= control target key end

     0   :  { %14 = vsyncpa [#allocation3], 0  ;;  %s6272_s0 = inlined_call_operand.vmem [shape: s32[8,1], index: 0, kind: input, shape index: {}]   ;;  %s6273_s1 = inlined_call_operand.hbm [shape: f32[128,128], index: 1, kind: input, shape index: {}]   ;;  %s6274_s2 = inlined_call_operand.hbm [shape: f32[3,32,128], index: 2, kind: input, shape index: {}]   ;;  %s6275_s3 = inlined_call_operand.vmem [shape: f32[2,8,128], index: 3, kind: input, shape index: {}]   ;;  %s6276_s4 = inlined_call_operand.hbm [shape: f32[32,128], index: 4, kind: input, shape index: {}]   ;;  %s6277_s5 = inlined_call_operand.vmem [shape: f32[8,128], index: 5, kind: input, shape index: {}]   ;;  %s6278_s6 = inlined_call_operand.hbm [shape: f32[4,8,32], index: 6, kind: input, shape index: {}]   ;;  %s6279_s7 = inlined_call_operand.hbm [shape: f32[8,8,128], index: 7, kind: output, shape index: {0}]   ;;  %s6280_s8 = inlined_call_operand.hbm [shape: f32[4,8,32], index: 8, kind: output, shape index: {1}]  }
   0x1   :  { %15 = vsyncpa [#allocation6], 0 }
   0x2   :  { %16 = vsyncpa [#allocation9], 0 }
   0x3   :  { %17 = vsyncpa [#allocation4], 0 }
   0x4   :  { %18 = vsyncpa [#allocation12], 0  ;;  %s5484_s27 = smov [#allocation5]   ;;  %s5485_s29 = smov [#allocation2]  }
   0x5   :  { %s38_s28 = sshll.u32 %s5484_s27, 4  ;;  %s26_s30 = sshll.u32 %s5485_s29, 4  ;;  %s39_s28 = int_to_ptr.vmem [resolvable:$true] %s38_s28  ;;  %s5545_s30 = int_to_ptr.vmem [resolvable:$true] %s26_s30 }
   0x6   :  { %s5342_s11 = scalar_lea.hbm %s6274_s2, 1536 }
   0x7   :  { %p5343_p0 = scmp.ne.s32.totalorder %s6274_s2, %s5342_s11  ;;  %p5346_p1 = scmp.lt.u32.totalorder %s5342_s11, %s6274_s2 }
   0x9   :  { %p5348_p2 = pnand %p5346_p1, %p5343_p0 }
   0xb   :  { %5351 = shalt.err (!%p5348_p2)
}
   0xc   :  { %s5352_s16 = scalar_lea.vmem %s39_s28, 1536  ;;  %p5357_p4 = scmp.lt.s32.totalorder %s39_s28, %s39_s28 }
   0xd   :  { %p5353_p3 = scmp.ne.s32.totalorder %s39_s28, %s5352_s16  ;;  %p5358_p5 = scmp.lt.s32.totalorder %s5352_s16, %s5352_s16 }
   0xf   :  { %p5359_p6 = por %p5358_p5, %p5357_p4 }
  0x11   :  { %p5360_p7 = pnand %p5359_p6, %p5353_p3 }
  0x13   :  { %5363 = shalt.err (!%p5360_p7)
}
  0x14   :  { %s5486_s17 = smov 128   ;;  %s5487_s18 = smov 8  }
  0x15   :  { %44 = dma.hbm_to_vmem [thread:$0]  %s6274_s2, 1536, %s39_s28, [#allocation6], %s5486_s17, %s5486_s17, %s5487_s18  }
  0x16   :  { %s5364_s23 = scalar_lea.hbm %s6273_s1, 2048 }
  0x17   :  { %p5365_p8 = scmp.ne.s32.totalorder %s6273_s1, %s5364_s23  ;;  %p5368_p9 = scmp.lt.u32.totalorder %s5364_s23, %s6273_s1 }
  0x19   :  { %p5370_p10 = pnand %p5368_p9, %p5365_p8 }
  0x1b   :  { %5373 = shalt.err (!%p5370_p10)
}
  0x1c   :  { %s5374_s29 = scalar_lea.vmem %s5545_s30, 2048  ;;  %p5379_p12 = scmp.lt.s32.totalorder %s5545_s30, %s5545_s30 }
  0x1d   :  { %p5375_p11 = scmp.ne.s32.totalorder %s5545_s30, %s5374_s29  ;;  %p5380_p13 = scmp.lt.s32.totalorder %s5374_s29, %s5374_s29 }
  0x1f   :  { %p5381_p0 = por %p5380_p13, %p5379_p12 }
  0x21   :  { %p5382_p1 = pnand %p5381_p0, %p5375_p11 }
  0x23   :  { %5385 = shalt.err (!%p5382_p1)
}
  0x24   :  { %32 = dma.hbm_to_vmem [thread:$0]  %s6273_s1, 2048, %s5545_s30, [#allocation3], %s5486_s17, %s5486_s17, %s5487_s18  }
  0x25   :  { %s5488_s9 = smov [#allocation7]   ;;  %s5489_s11 = smov [#allocation8]  }
  0x26   :  { %s52_s10 = sshll.u32 %s5488_s9, 4  ;;  %s66_s12 = sshll.u32 %s5489_s11, 4  ;;  %s53_s10 = int_to_ptr.vmem [resolvable:$true] %s52_s10  ;;  %s5582_s12 = int_to_ptr.vmem [resolvable:$true] %s66_s12 }
  0x27   :  { %s5386_s15 = scalar_lea.hbm %s6276_s4, 512 }
  0x28   :  { %p5387_p2 = scmp.ne.s32.totalorder %s6276_s4, %s5386_s15  ;;  %p5390_p3 = scmp.lt.u32.totalorder %s5386_s15, %s6276_s4 }
  0x2a   :  { %p5392_p4 = pnand %p5390_p3, %p5387_p2 }
  0x2c   :  { %5395 = shalt.err (!%p5392_p4)
}
  0x2d   :  { %s5396_s1 = scalar_lea.vmem %s53_s10, 512  ;;  %p5401_p6 = scmp.lt.s32.totalorder %s53_s10, %s53_s10 }
  0x2e   :  { %p5397_p5 = scmp.ne.s32.totalorder %s53_s10, %s5396_s1  ;;  %p5402_p7 = scmp.lt.s32.totalorder %s5396_s1, %s5396_s1 }
  0x30   :  { %p5403_p8 = por %p5402_p7, %p5401_p6 }
  0x32   :  { %p5404_p9 = pnand %p5403_p8, %p5397_p5 }
  0x34   :  { %5407 = shalt.err (!%p5404_p9)
}
  0x35   :  { %58 = dma.hbm_to_vmem [thread:$0]  %s6276_s4, 512, %s53_s10, [#allocation6], %s5486_s17, %s5486_s17, %s5487_s18  }
  0x36   :  { %s5408_s25 = scalar_lea.hbm %s6278_s6, 512 }
  0x37   :  { %p5409_p10 = scmp.ne.s32.totalorder %s6278_s6, %s5408_s25  ;;  %p5412_p11 = scmp.lt.u32.totalorder %s5408_s25, %s6278_s6 }
  0x39   :  { %p5414_p12 = pnand %p5412_p11, %p5409_p10 }
  0x3b   :  { %5417 = shalt.err (!%p5414_p12)
}
  0x3c   :  { %s5418_s28 = scalar_lea.vmem %s5582_s12, 512  ;;  %p5423_p0 = scmp.lt.s32.totalorder %s5582_s12, %s5582_s12 }
  0x3d   :  { %p5419_p13 = scmp.ne.s32.totalorder %s5582_s12, %s5418_s28  ;;  %p5424_p1 = scmp.lt.s32.totalorder %s5418_s28, %s5418_s28 }
  0x3f   :  { %p5425_p2 = por %p5424_p1, %p5423_p0 }
  0x41   :  { %p5426_p3 = pnand %p5425_p2, %p5419_p13 }
  0x43   :  { %5429 = shalt.err (!%p5426_p3)
}
  0x44   :  { %72 = dma.hbm_to_vmem [thread:$0]  %s6278_s6, 512, %s5582_s12, [#allocation9], %s5486_s17, %s5486_s17, %s5487_s18  }
  0x45   :  { %5474 = dma.done.wait [#allocation3], 2048  }
  0x46   :  { %5475 = vsyncadd [#allocation3], 4294965248 }
  0x47   :  { %5476 = dma.done.wait [#allocation6], 2048  }
  0x48   :  { %5477 = vsyncadd [#allocation6], 4294965248 }
  0x49   :  { %5478 = dma.done.wait [#allocation9], 512  }
  0x4a   :  { %5479 = vsyncadd [#allocation9], 4294966784  ;;  %v5490_v0 = vmov 0   ;;  %v5491_v1 = vmov 0.0|0.0   ;;  %vm5492_vm0 = vmmov 0   ;;  %v5493_v2 = vmov 0.0  }
  0x4b   :  { %5245 = vset.pattern.permute.xlu0 %v5490_v0  ;;  %4797 = vmatprep.subr.bf16.mxu0 %v5491_v1  ;;  %v94_v3 = vld [vmem:[%s6272_s0] sm:$0xff]  ;;  %v101_v4 = vld [vmem:[#allocation5] sm:$0xff]  ;;  %v103_v7 = vld [vmem:[#allocation5 + $0x10] sm:$0xff]  ;;  %vm106_vm1 = vcmask 261120   ;;  %s5494_s0 = smov 32   ;;  %v85_v43 = vlaneseq  ;;  %v5495_v46 = vmov 1.0  }
  0x4c   :  { %4173 = vmatprep.mubr.msk.f32.mxu0 %vm5492_vm0, %v5493_v2  ;;  %4839 = vmatprep.subr.bf16.mxu1 %v5491_v1  ;;  %v102_v5 = vld [vmem:[#allocation5 + $0x8] sm:$0xff]  ;;  %v104_v8 = vld [vmem:[#allocation5 + $0x18] sm:$0xff]  ;;  %v181_v10 = vld [vmem:[#allocation5 + $0x40] sm:$0xff]  ;;  %s5496_s13 = smov 64   ;;  %s5498_s23 = smov [#allocation11]  }
  0x4d   :  { %4241 = vmatprep.mubr.msk.f32.mxu1 %vm5492_vm0, %v5493_v2  ;;  %96 = vperm.xlu0 %5245, %v94_v3   ;;  %v5628_v6 = vpack.c.bf16 %v102_v5, %v101_v4  ;;  %v5631_v9 = vpack.c.bf16 %v104_v8, %v103_v7  ;;  %v182_v11 = vld [vmem:[#allocation5 + $0x48] sm:$0xff]  ;;  %v87_v12 = vld [vmem:[#allocation8] sm:$0xff]  ;;  %v183_v14 = vld [vmem:[#allocation5 + $0x50] sm:$0xff]  ;;  %v86_v44 = vand.u32 127, %v85_v43  ;;  %s3763_s24 = sshll.u32 %s5498_s23, 4  ;;  %s3764_s24 = int_to_ptr.vmem [resolvable:$true] %s3763_s24 }
  0x4e   :  { %v5635_v13 = vpack.c.bf16 %v182_v11, %v181_v10  ;;  %v184_v15 = vld [vmem:[#allocation5 + $0x58] sm:$0xff]  ;;  %v91_v16 = vld [vmem:[#allocation8 + $0x10] sm:$0xff]  ;;  %v260_v18 = vld [vmem:[#allocation2] sm:$0xff]  ;;  %s5430_s25 = scalar_lea.vmem %s3764_s24, 512  ;;  %p5435_p5 = scmp.lt.s32.totalorder %s3764_s24, %s3764_s24 }
  0x4f   :  { %4799 = vmatpush3.bf16.msra.mxu0 %v5628_v6  ;;  %355 = vrot.lane.b32.xlu1 %v91_v16, %s5494_s0  ;;  %v5641_v17 = vpack.c.bf16 %v184_v15, %v183_v14  ;;  %v261_v19 = vld [vmem:[#allocation2 + $0x8] sm:$0xff]  ;;  %v262_v22 = vld [vmem:[#allocation2 + $0x10] sm:$0xff]  ;;  %v263_v23 = vld [vmem:[#allocation2 + $0x18] sm:$0xff]  ;;  %p5431_p4 = scmp.ne.s32.totalorder %s3764_s24, %s5430_s25  ;;  %p5436_p6 = scmp.lt.s32.totalorder %s5430_s25, %s5430_s25 }
  0x50   :  { %4800 = vmatprep.subr.bf16.mxu0 %v5491_v1  ;;  %v89_v20 = vld [vmem:[#allocation8 + $0x8] sm:$0xff]  ;;  %v5647_v21 = vpack.c.bf16 %v261_v19, %v260_v18  ;;  %v5652_v24 = vpack.c.bf16 %v263_v23, %v262_v22  ;;  %v264_v25 = vld [vmem:[#allocation2 + $0x20] sm:$0xff]  ;;  %v266_v28 = vld [vmem:[#allocation2 + $0x30] sm:$0xff] }
  0x51   :  { %v265_v26 = vld [vmem:[#allocation2 + $0x28] sm:$0xff]  ;;  %v267_v29 = vld [vmem:[#allocation2 + $0x38] sm:$0xff]  ;;  %v268_v31 = vld [vmem:[#allocation2 + $0x40] sm:$0xff]  ;;  %p5437_p7 = por %p5436_p6, %p5435_p5 }
  0x52   :  { %v5658_v27 = vpack.c.bf16 %v265_v26, %v264_v25  ;;  %v5662_v30 = vpack.c.bf16 %v267_v29, %v266_v28  ;;  %v269_v32 = vld [vmem:[#allocation2 + $0x48] sm:$0xff]  ;;  %v270_v34 = vld [vmem:[#allocation2 + $0x50] sm:$0xff]  ;;  %v271_v35 = vld [vmem:[#allocation2 + $0x58] sm:$0xff] }
  0x53   :  { %4802 = vmatpush3.bf16.msra.mxu0 %v5631_v9  ;;  %v5666_v33 = vpack.c.bf16 %v269_v32, %v268_v31  ;;  %v5670_v36 = vpack.c.bf16 %v271_v35, %v270_v34  ;;  %v272_v37 = vld [vmem:[#allocation2 + $0x60] sm:$0xff]  ;;  %v273_v38 = vld [vmem:[#allocation2 + $0x68] sm:$0xff]  ;;  %v274_v40 = vld [vmem:[#allocation2 + $0x70] sm:$0xff]  ;;  %p5438_p8 = pnand %p5437_p7, %p5431_p4 }
  0x54   :  { %4803 = vmatprep.subr.bf16.mxu0 %v5491_v1  ;;  %v5674_v39 = vpack.c.bf16 %v273_v38, %v272_v37  ;;  %v275_v41 = vld [vmem:[#allocation2 + $0x78] sm:$0xff]  ;;  %v5689_v47 = vld [vmem:[%s6275_s3] sm:$0xff]  ;;  %v376_v63 = vld [vmem:[#allocation5 + $0x20] sm:$0xff] }
  0x55   :  { %v5678_v42 = vpack.c.bf16 %v275_v41, %v274_v40  ;;  %v377_v0 = vld [vmem:[#allocation5 + $0x28] sm:$0xff]  ;;  %v378_v3 = vld [vmem:[#allocation5 + $0x30] sm:$0xff]  ;;  %v379_v5 = vld [vmem:[#allocation5 + $0x38] sm:$0xff] }
  0x56   :  { %4174 = vmatmul.mubr.msk.f32.vlgmr.msra.gmra.mrb[0].mxu0 %vm106_vm1, %v87_v12  ;;  %v5697_v4 = vpack.c.bf16 %v377_v0, %v376_v63  ;;  %v5700_v7 = vpack.c.bf16 %v379_v5, %v378_v3  ;;  %v93_v12 = vld [vmem:[#allocation8 + $0x18] sm:$0xff]  ;;  %v5714_v15 = vld [vmem:[%s6275_s3 + $0x8] sm:$0xff]  ;;  %v484_v38 = vld [vmem:[#allocation7] sm:$0xff] }
  0x57   :  { %4805 = vmatpush3.bf16.msra.mxu0 %v5635_v13  ;;  %4184 = vmatprep.mubr.msk.f32.mxu0 %vm5492_vm0, %v5493_v2  ;;  %v485_v40 = vld [vmem:[#allocation7 + $0x8] sm:$0xff]  ;;  %v486_v41 = vld [vmem:[#allocation7 + $0x10] sm:$0xff] }
  0x58   :  { %4806 = vmatprep.subr.bf16.mxu0 %v5491_v1  ;;  %v5722_v43 = vpack.c.bf16 %v485_v40, %v484_v38 }
  0x5a   :  { %4841 = vmatpush3.bf16.msra.mxu1 %v5722_v43 }
  0x5b   :  { %4808 = vmatpush3.bf16.msra.mxu0 %v5641_v17  ;;  %4842 = vmatprep.subr.bf16.mxu1 %v5491_v1 }
  0x5c   :  { %4809 = vmatprep.subr.bf16.mxu0 %v5491_v1 }
  0x5e   :  { %4185 = vmatmul.mubr.msk.f32.vlgmr.msra.gmra.mrb[2].mxu0 %vm106_vm1, %v89_v20 }
  0x5f   :  { %4811 = vmatpush3.bf16.msra.mxu0 %v5647_v21  ;;  %4219 = vmatprep.mubr.msk.f32.mxu0 %vm5492_vm0, %v5493_v2 }
  0x60   :  { %4812 = vmatprep.subr.bf16.mxu0 %v5491_v1 }
  0x63   :  { %4814 = vmatpush3.bf16.msra.mxu0 %v5652_v24 }
  0x64   :  { %4815 = vmatprep.subr.bf16.mxu0 %v5491_v1 }
  0x67   :  { %4817 = vmatpush3.bf16.msra.mxu0 %v5658_v27 }
  0x68   :  { %4818 = vmatprep.subr.bf16.mxu0 %v5491_v1 }
  0x6b   :  { %4820 = vmatpush3.bf16.msra.mxu0 %v5662_v30 }
  0x6c   :  { %4821 = vmatprep.subr.bf16.mxu0 %v5491_v1 }
  0x6f   :  { %4823 = vmatpush3.bf16.msra.mxu0 %v5666_v33 }
  0x70   :  { %4824 = vmatprep.subr.bf16.mxu0 %v5491_v1 }
  0x73   :  { %4826 = vmatpush3.bf16.msra.mxu0 %v5670_v36 }
  0x74   :  { %4827 = vmatprep.subr.bf16.mxu0 %v5491_v1 }
  0x77   :  { %4829 = vmatpush3.bf16.msra.mxu0 %v5674_v39 }
  0x78   :  { %4830 = vmatprep.subr.bf16.mxu0 %v5491_v1 }
  0x7b   :  { %4832 = vmatpush3.bf16.msra.mxu0 %v5678_v42 }
  0x7c   :  { %4833 = vmatprep.subr.bf16.mxu0 %v5491_v1 }
  0xc1   :  { %v356_v59 = vpop.permute.xlu1 %355 }
  0xcc   :  { %v97_v45 = vpop.permute.xlu0 %96 }
  0xcd   :  { %vm98_vm2 = vcmp.eq.s32.totalorder %v86_v44, %v97_v45  ;;  %v487_v44 = vld [vmem:[#allocation7 + $0x18] sm:$0xff] }
  0xce   :  { %4220 = vmatmul.mubr.msk.f32.vlgmr.msra.gmra.mrb[0].mxu0 %vm98_vm2, %v5495_v46  ;;  %v5725_v45 = vpack.c.bf16 %v487_v44, %v486_v41 }
  0xcf   :  { %4230 = vmatprep.mubr.msk.f32.mxu0 %vm5492_vm0, %v5493_v2  ;;  %4835 = vmatpush3.bf16.msra.mxu0 %v5697_v4 }
  0xd0   :  { %4836 = vmatprep.subr.bf16.mxu0 %v5491_v1  ;;  %4844 = vmatpush3.bf16.msra.mxu1 %v5725_v45 }
  0xd1   :  { %4845 = vmatprep.subr.bf16.mxu1 %v5491_v1 }
  0xd3   :  { %4838 = vmatpush3.bf16.msra.mxu0 %v5700_v7 }
  0xd4   :  { %4887 = vmatprep.subr.bf16.mxu0 %v5491_v1 }
 0x1a1   :  { %v342_v48 = vpop.f32.mrb[0].mxu0 }
 0x1a2   :  { %v5181_v49 = vadd.f32 %v342_v48, %v5689_v47  ;;  %v4221_v50 = vpop.f32.mrb[1].mxu0 }
 0x1a4   :  { %v3786_v51 = vmul.f32 -1.442695, %v5181_v49 }
 0x1a6   :  { %5246 = vpow2.f32 %v3786_v51 }
 0x1b0   :  { %v5247_v52 = vpop.eup %5246 }
 0x1b1   :  { %v349_v53 = vadd.f32 1.0, %v5247_v52  ;;  %v5772_v52 = vld [vmem:[%s6277_s5] sm:$0xff] }
 0x1b3   :  { %5248 = vrcp.f32 %v349_v53 }
 0x1bd   :  { %v5249_v54 = vpop.eup %5248 }
 0x1be   :  { %v352_v55 = vmul.f32 2.0, %v5249_v54  ;;  %v358_v60 = vmul.f32 %v5249_v54, %v356_v59 }
 0x1c0   :  { %v3787_v56 = vadd.f32 -1.0, %v352_v55 }
 0x1c2   :  { %360 = vrot.lane.b32.xlu0 %v3787_v56, %s5496_s13 }
 0x234   :  { %v361_v57 = vpop.permute.xlu0 %360 }
 0x235   :  { %v363_v58 = vmul.f32 %v5249_v54, %v361_v57 }
 0x237   :  { %365 = vrot.lane.b32.xlu1 %v363_v58, %s5494_s0 }
 0x2a9   :  { %v366_v61 = vpop.permute.xlu1 %365 }
 0x2aa   :  { %v5694_v62 = vadd.f32 %v366_v61, %v358_v60 }
 0x2ac   :  { %5250 = vtanh.f32 %v5694_v62 }
 0x2b6   :  { %v5251_v8 = vpop.eup %5250 }
 0x2b7   :  { %371 = vrot.lane.b32.xlu0 %v5251_v8, %s5496_s13 }
 0x329   :  { %v372_v10 = vpop.permute.xlu0 %371 }
 0x32a   :  { %v374_v11 = vmul.f32 %v5249_v54, %v372_v10 }
 0x32c   :  { %381 = vrot.lane.b32.xlu1 %v374_v11, %s5494_s0 }
 0x330   :  { %464 = vrot.lane.b32.xlu1 %v93_v12, %s5494_s0 }
 0x39e   :  { %v382_v14 = vpop.permute.xlu1 %381 }
 0x39f   :  { %4231 = vmatmul.mubr.msk.f32.vlgmr.msra.gmra.mrb[2].mxu0 %vm106_vm1, %v382_v14 }
 0x3a0   :  { %4320 = vmatprep.mubr.msk.f32.mxu0 %vm5492_vm0, %v5493_v2  ;;  %4889 = vmatpush3.bf16.msra.mxu0 %v5722_v43 }
 0x3a1   :  { %4890 = vmatprep.subr.bf16.mxu0 %v5491_v1 }
 0x3a2   :  { %v465_v32 = vpop.permute.xlu1 %464 }
 0x3a4   :  { %4892 = vmatpush3.bf16.msra.mxu0 %v5725_v45 }
 0x3a5   :  { %4893 = vmatprep.subr.bf16.mxu0 %v5491_v1 }
 0x472   :  { %v451_v16 = vpop.f32.mrb[2].mxu0 }
 0x473   :  { %v5182_v18 = vadd.f32 %v5714_v15, %v451_v16  ;;  %v4232_v19 = vpop.f32.mrb[3].mxu0 }
 0x475   :  { %v3789_v20 = vmul.f32 -1.442695, %v5182_v18 }
 0x477   :  { %5252 = vpow2.f32 %v3789_v20 }
 0x481   :  { %v5253_v22 = vpop.eup %5252 }
 0x482   :  { %v458_v23 = vadd.f32 1.0, %v5253_v22 }
 0x484   :  { %5254 = vrcp.f32 %v458_v23 }
 0x48e   :  { %v5255_v25 = vpop.eup %5254 }
 0x48f   :  { %v461_v26 = vmul.f32 2.0, %v5255_v25  ;;  %v467_v34 = vmul.f32 %v5255_v25, %v465_v32 }
 0x491   :  { %v3790_v28 = vadd.f32 -1.0, %v461_v26 }
 0x493   :  { %469 = vrot.lane.b32.xlu0 %v3790_v28, %s5496_s13 }
 0x505   :  { %v470_v29 = vpop.permute.xlu0 %469 }
 0x506   :  { %v472_v31 = vmul.f32 %v5255_v25, %v470_v29 }
 0x508   :  { %474 = vrot.lane.b32.xlu0 %v472_v31, %s5494_s0 }
 0x57a   :  { %v475_v35 = vpop.permute.xlu0 %474 }
 0x57b   :  { %v5719_v37 = vadd.f32 %v475_v35, %v467_v34 }
 0x57d   :  { %5256 = vtanh.f32 %v5719_v37 }
 0x587   :  { %v5257_v48 = vpop.eup %5256 }
 0x588   :  { %480 = vrot.lane.b32.xlu1 %v5257_v48, %s5496_s13 }
 0x5fa   :  { %v481_v49 = vpop.permute.xlu1 %480 }
 0x5fb   :  { %v483_v50 = vmul.f32 %v5255_v25, %v481_v49 }
 0x5fd   :  { %490 = vrot.lane.b32.xlu0 %v483_v50, %s5494_s0 }
 0x66f   :  { %v491_v51 = vpop.permute.xlu0 %490 }
 0x670   :  { %4242 = vmatmul.mubr.msk.f32.vlgmr.msra.gmra.mrb[0].mxu1 %vm106_vm1, %v491_v51 }
 0x671   :  { %4847 = vmatpush3.bf16.msra.mxu1 %v5628_v6  ;;  %4252 = vmatprep.mubr.msk.f32.mxu1 %vm5492_vm0, %v5493_v2 }
 0x672   :  { %4848 = vmatprep.subr.bf16.mxu1 %v5491_v1 }
 0x675   :  { %4850 = vmatpush3.bf16.msra.mxu1 %v5631_v9 }
 0x676   :  { %4851 = vmatprep.subr.bf16.mxu1 %v5491_v1 }
 0x678   :  { %4253 = vmatmul.mubr.msk.f32.vlgmr.msra.gmra.mrb[2].mxu1 %vm106_vm1, %v382_v14 }
 0x679   :  { %4853 = vmatpush3.bf16.msra.mxu1 %v5635_v13  ;;  %4263 = vmatprep.mubr.msk.f32.mxu1 %vm5492_vm0, %v5493_v2 }
 0x67a   :  { %4854 = vmatprep.subr.bf16.mxu1 %v5491_v1 }
 0x67d   :  { %4856 = vmatpush3.bf16.msra.mxu1 %v5641_v17 }
 0x67e   :  { %4857 = vmatprep.subr.bf16.mxu1 %v5491_v1 }
 0x680   :  { %4264 = vmatmul.mubr.msk.f32.vlgmr.msra.gmra.mrb[4].mxu1 %vm106_vm1, %v491_v51 }
 0x681   :  { %4859 = vmatpush3.bf16.msra.mxu1 %v5647_v21  ;;  %4298 = vmatprep.mubr.msk.f32.mxu1 %vm5492_vm0, %v5493_v2 }
 0x682   :  { %4860 = vmatprep.subr.bf16.mxu1 %v5491_v1 }
 0x685   :  { %4862 = vmatpush3.bf16.msra.mxu1 %v5652_v24 }
 0x686   :  { %4863 = vmatprep.subr.bf16.mxu1 %v5491_v1 }
 0x689   :  { %4865 = vmatpush3.bf16.msra.mxu1 %v5658_v27 }
 0x68a   :  { %4866 = vmatprep.subr.bf16.mxu1 %v5491_v1 }
 0x68d   :  { %4868 = vmatpush3.bf16.msra.mxu1 %v5662_v30 }
 0x68e   :  { %4869 = vmatprep.subr.bf16.mxu1 %v5491_v1 }
 0x691   :  { %4871 = vmatpush3.bf16.msra.mxu1 %v5666_v33 }
 0x692   :  { %4872 = vmatprep.subr.bf16.mxu1 %v5491_v1 }
 0x695   :  { %4874 = vmatpush3.bf16.msra.mxu1 %v5670_v36 }
 0x696   :  { %4875 = vmatprep.subr.bf16.mxu1 %v5491_v1 }
 0x699   :  { %4877 = vmatpush3.bf16.msra.mxu1 %v5674_v39 }
 0x69a   :  { %4878 = vmatprep.subr.bf16.mxu1 %v5491_v1 }
 0x69d   :  { %4880 = vmatpush3.bf16.msra.mxu1 %v5678_v42 }
 0x69e   :  { %4881 = vmatprep.subr.bf16.mxu1 %v5491_v1 }
 0x743   :  { %v560_v53 = vpop.f32.mrb[0].mxu1 }
 0x744   :  { %v561_v54 = vadd.f32 %v560_v53, %v5772_v52  ;;  %v4243_v55 = vpop.f32.mrb[1].mxu1 }
 0x746   :  { %564 = vst [vmem:[#allocation10] sm:$0xff] %v561_v54  ;;  %565 = vmax.xlane.f32.xlu1 %v561_v54 }
 0x7d3   :  { %v566_v56 = vpop.xlane.xlu1 %565 }
 0x7d4   :  { %vm567_vm3 = vcmp.eq.f32.partialorder %v561_v54, %v566_v56 }
 0x7d5   :  { %4299 = vmatmul.mubr.msk.f32.vlgmr.msra.gmra.mrb[2].mxu1 %vm567_vm3, %v5495_v46 }
 0x7d6   :  { %4883 = vmatpush3.bf16.msra.mxu1 %v5697_v4  ;;  %4309 = vmatprep.mubr.msk.f32.mxu1 %vm5492_vm0, %v5493_v2 }
 0x7d7   :  { %4884 = vmatprep.subr.bf16.mxu1 %v5491_v1 }
 0x7da   :  { %4886 = vmatpush3.bf16.msra.mxu1 %v5700_v7 }
 0x7db   :  { %4935 = vmatprep.subr.bf16.mxu1 %v5491_v1 }
 0x8a8   :  { %v802_v57 = vpop.f32.mrb[2].mxu1 }
 0x8a9   :  { %v5183_v58 = vadd.f32 %v802_v57, %v5689_v47  ;;  %v4300_v59 = vpop.f32.mrb[3].mxu1 }
 0x8ab   :  { %v3797_v60 = vmul.f32 -1.442695, %v5183_v58 }
 0x8ad   :  { %5258 = vpow2.f32 %v3797_v60 }
 0x8b7   :  { %v5259_v61 = vpop.eup %5258 }
 0x8b8   :  { %v809_v63 = vadd.f32 1.0, %v5259_v61 }
 0x8ba   :  { %5260 = vrcp.f32 %v809_v63 }
 0x8c4   :  { %v5261_v0 = vpop.eup %5260 }
 0x8c5   :  { %v812_v3 = vmul.f32 2.0, %v5261_v0  ;;  %v814_v11 = vmul.f32 %v5261_v0, %v5694_v62 }
 0x8c7   :  { %v3798_v5 = vadd.f32 -1.0, %v812_v3 }
 0x8c9   :  { %816 = vrot.lane.b32.xlu0 %v3798_v5, %s5496_s13 }
 0x93b   :  { %v817_v8 = vpop.permute.xlu0 %816 }
 0x93c   :  { %v819_v10 = vmul.f32 %v5261_v0, %v817_v8 }
 0x93e   :  { %821 = vrot.lane.b32.xlu0 %v819_v10, %s5494_s0 }
 0x9b0   :  { %v822_v12 = vpop.permute.xlu0 %821 }
 0x9b1   :  { %v5786_v14 = vadd.f32 %v822_v12, %v814_v11 }
 0x9b3   :  { %5262 = vtanh.f32 %v5786_v14 }
 0x9bd   :  { %v5263_v16 = vpop.eup %5262 }
 0x9be   :  { %827 = vrot.lane.b32.xlu0 %v5263_v16, %s5496_s13 }
 0xa30   :  { %v828_v18 = vpop.permute.xlu0 %827 }
 0xa31   :  { %v830_v19 = vmul.f32 %v5261_v0, %v828_v18 }
 0xa33   :  { %836 = vrot.lane.b32.xlu0 %v830_v19, %s5494_s0 }
 0xaa5   :  { %v837_v20 = vpop.permute.xlu0 %836 }
 0xaa6   :  { %4310 = vmatmul.mubr.msk.f32.vlgmr.msra.gmra.mrb[4].mxu1 %vm106_vm1, %v837_v20 }
 0xaa7   :  { %4937 = vmatpush3.bf16.msra.mxu1 %v5722_v43  ;;  %4399 = vmatprep.mubr.msk.f32.mxu1 %vm5492_vm0, %v5493_v2 }
 0xaa8   :  { %4938 = vmatprep.subr.bf16.mxu1 %v5491_v1 }
 0xaab   :  { %4940 = vmatpush3.bf16.msra.mxu1 %v5725_v45 }
 0xaac   :  { %4941 = vmatprep.subr.bf16.mxu1 %v5491_v1 }
 0xb79   :  { %v906_v62 = vpop.f32.mrb[4].mxu1 }
 0xb7a   :  { %v5184_v22 = vadd.f32 %v5714_v15, %v906_v62  ;;  %v4311_v23 = vpop.f32.mrb[5].mxu1 }
 0xb7c   :  { %v3800_v25 = vmul.f32 -1.442695, %v5184_v22 }
 0xb7e   :  { %5264 = vpow2.f32 %v3800_v25 }
 0xb88   :  { %v5265_v26 = vpop.eup %5264 }
 0xb89   :  { %v913_v28 = vadd.f32 1.0, %v5265_v26 }
 0xb8b   :  { %5266 = vrcp.f32 %v913_v28 }
 0xb95   :  { %v5267_v29 = vpop.eup %5266 }
 0xb96   :  { %v916_v31 = vmul.f32 2.0, %v5267_v29  ;;  %v918_v38 = vmul.f32 %v5267_v29, %v5719_v37 }
 0xb98   :  { %v3801_v32 = vadd.f32 -1.0, %v916_v31 }
 0xb9a   :  { %920 = vrot.lane.b32.xlu0 %v3801_v32, %s5496_s13 }
 0xc0c   :  { %v921_v34 = vpop.permute.xlu0 %920 }
 0xc0d   :  { %v923_v35 = vmul.f32 %v5267_v29, %v921_v34 }
 0xc0f   :  { %925 = vrot.lane.b32.xlu0 %v923_v35, %s5494_s0 }
 0xc81   :  { %v926_v40 = vpop.permute.xlu0 %925 }
 0xc82   :  { %v5802_v41 = vadd.f32 %v926_v40, %v918_v38 }
 0xc84   :  { %5268 = vtanh.f32 %v5802_v41 }
 0xc8e   :  { %v5269_v44 = vpop.eup %5268 }
 0xc8f   :  { %931 = vrot.lane.b32.xlu0 %v5269_v44, %s5496_s13 }
 0xd01   :  { %v932_v48 = vpop.permute.xlu0 %931 }
 0xd02   :  { %v934_v49 = vmul.f32 %v5267_v29, %v932_v48 }
 0xd04   :  { %941 = vrot.lane.b32.xlu0 %v934_v49, %s5494_s0 }
 0xd76   :  { %v942_v50 = vpop.permute.xlu0 %941 }
 0xd77   :  { %4321 = vmatmul.mubr.msk.f32.vlgmr.msra.gmra.mrb[4].mxu0 %vm106_vm1, %v942_v50 }
 0xd78   :  { %4895 = vmatpush3.bf16.msra.mxu0 %v5628_v6  ;;  %4331 = vmatprep.mubr.msk.f32.mxu0 %vm5492_vm0, %v5493_v2 }
 0xd79   :  { %4896 = vmatprep.subr.bf16.mxu0 %v5491_v1 }
 0xd7c   :  { %4898 = vmatpush3.bf16.msra.mxu0 %v5631_v9 }
 0xd7d   :  { %4899 = vmatprep.subr.bf16.mxu0 %v5491_v1 }
 0xd7f   :  { %4332 = vmatmul.mubr.msk.f32.vlgmr.msra.gmra.mrb[6].mxu0 %vm106_vm1, %v837_v20 }
 0xd80   :  { %4901 = vmatpush3.bf16.msra.mxu0 %v5635_v13  ;;  %4342 = vmatprep.mubr.msk.f32.mxu0 %vm5492_vm0, %v5493_v2 }
 0xd81   :  { %4902 = vmatprep.subr.bf16.mxu0 %v5491_v1 }
 0xd84   :  { %4904 = vmatpush3.bf16.msra.mxu0 %v5641_v17 }
 0xd85   :  { %4905 = vmatprep.subr.bf16.mxu0 %v5491_v1 }
 0xd87   :  { %4343 = vmatmul.mubr.msk.f32.vlgmr.msra.gmra.mrb[8].mxu0 %vm106_vm1, %v942_v50 }
 0xd88   :  { %4907 = vmatpush3.bf16.msra.mxu0 %v5647_v21  ;;  %4377 = vmatprep.mubr.msk.f32.mxu0 %vm5492_vm0, %v5493_v2 }
 0xd89   :  { %4908 = vmatprep.subr.bf16.mxu0 %v5491_v1 }
 0xd8c   :  { %4910 = vmatpush3.bf16.msra.mxu0 %v5652_v24 }
 0xd8d   :  { %4911 = vmatprep.subr.bf16.mxu0 %v5491_v1 }
 0xd90   :  { %4913 = vmatpush3.bf16.msra.mxu0 %v5658_v27 }
 0xd91   :  { %4914 = vmatprep.subr.bf16.mxu0 %v5491_v1 }
 0xd94   :  { %4916 = vmatpush3.bf16.msra.mxu0 %v5662_v30 }
 0xd95   :  { %4917 = vmatprep.subr.bf16.mxu0 %v5491_v1 }
 0xd98   :  { %4919 = vmatpush3.bf16.msra.mxu0 %v5666_v33 }
 0xd99   :  { %4920 = vmatprep.subr.bf16.mxu0 %v5491_v1 }
 0xd9c   :  { %4922 = vmatpush3.bf16.msra.mxu0 %v5670_v36 }
 0xd9d   :  { %4923 = vmatprep.subr.bf16.mxu0 %v5491_v1 }
 0xda0   :  { %4925 = vmatpush3.bf16.msra.mxu0 %v5674_v39 }
 0xda1   :  { %4926 = vmatprep.subr.bf16.mxu0 %v5491_v1 }
 0xda4   :  { %4928 = vmatpush3.bf16.msra.mxu0 %v5678_v42 }
 0xda5   :  { %4929 = vmatprep.subr.bf16.mxu0 %v5491_v1 }
 0xe4a   :  { %v1011_v37 = vpop.f32.mrb[4].mxu0 }
 0xe4b   :  { %v1012_v51 = vadd.f32 %v1011_v37, %v5772_v52  ;;  %v4322_v53 = vpop.f32.mrb[5].mxu0 }
 0xe4d   :  { %1016 = vst [vmem:[#allocation10 + $0x8] sm:$0xff] %v1012_v51  ;;  %1017 = vmax.xlane.f32.xlu0 %v1012_v51 }
 0xeda   :  { %v1018_v54 = vpop.xlane.xlu0 %1017 }
 0xedb   :  { %vm1019_vm4 = vcmp.eq.f32.partialorder %v1012_v51, %v1018_v54 }
 0xedc   :  { %4378 = vmatmul.mubr.msk.f32.vlgmr.msra.gmra.mrb[6].mxu0 %vm1019_vm4, %v5495_v46 }
 0xedd   :  { %4931 = vmatpush3.bf16.msra.mxu0 %v5697_v4  ;;  %4388 = vmatprep.mubr.msk.f32.mxu0 %vm5492_vm0, %v5493_v2 }
 0xede   :  { %4932 = vmatprep.subr.bf16.mxu0 %v5491_v1 }
 0xee1   :  { %4934 = vmatpush3.bf16.msra.mxu0 %v5700_v7 }
 0xee2   :  { %4983 = vmatprep.subr.bf16.mxu0 %v5491_v1 }
 0xfaf   :  { %v1254_v55 = vpop.f32.mrb[6].mxu0 }
 0xfb0   :  { %v5185_v56 = vadd.f32 %v1254_v55, %v5689_v47  ;;  %v4379_v57 = vpop.f32.mrb[7].mxu0 }
 0xfb2   :  { %v3808_v58 = vmul.f32 -1.442695, %v5185_v56 }
 0xfb4   :  { %5270 = vpow2.f32 %v3808_v58 }
 0xfbe   :  { %v5271_v59 = vpop.eup %5270 }
 0xfbf   :  { %v1261_v60 = vadd.f32 1.0, %v5271_v59 }
 0xfc1   :  { %5272 = vrcp.f32 %v1261_v60 }
 0xfcb   :  { %v5273_v61 = vpop.eup %5272 }
 0xfcc   :  { %v1264_v63 = vmul.f32 2.0, %v5273_v61  ;;  %v1266_v8 = vmul.f32 %v5273_v61, %v5786_v14 }
 0xfce   :  { %v3809_v0 = vadd.f32 -1.0, %v1264_v63 }
 0xfd0   :  { %1268 = vrot.lane.b32.xlu1 %v3809_v0, %s5496_s13 }
0x1042   :  { %v1269_v3 = vpop.permute.xlu1 %1268 }
0x1043   :  { %v1271_v5 = vmul.f32 %v5273_v61, %v1269_v3 }
0x1045   :  { %1273 = vrot.lane.b32.xlu1 %v1271_v5, %s5494_s0 }
0x10b7   :  { %v1274_v10 = vpop.permute.xlu1 %1273 }
0x10b8   :  { %v5852_v11 = vadd.f32 %v1274_v10, %v1266_v8 }
0x10ba   :  { %5274 = vtanh.f32 %v5852_v11 }
0x10c4   :  { %v5275_v12 = vpop.eup %5274 }
0x10c5   :  { %1279 = vrot.lane.b32.xlu1 %v5275_v12, %s5496_s13 }
0x1137   :  { %v1280_v16 = vpop.permute.xlu1 %1279 }
0x1138   :  { %v1282_v18 = vmul.f32 %v5273_v61, %v1280_v16  ;;  %v1926_v16 = vld [vmem:[#allocation5] sm:$0xff] }
0x113a   :  { %1288 = vrot.lane.b32.xlu1 %v1282_v18, %s5494_s0  ;;  %v1927_v18 = vld [vmem:[#allocation5 + $0x8] sm:$0xff] }
0x11ac   :  { %v1289_v19 = vpop.permute.xlu1 %1288 }
0x11ad   :  { %4389 = vmatmul.mubr.msk.f32.vlgmr.msra.gmra.mrb[8].mxu0 %vm106_vm1, %v1289_v19 }
0x11ae   :  { %4985 = vmatpush3.bf16.msra.mxu0 %v5722_v43  ;;  %4478 = vmatprep.mubr.msk.f32.mxu0 %vm5492_vm0, %v5493_v2 }
0x11af   :  { %4986 = vmatprep.subr.bf16.mxu0 %v5491_v1 }
0x11b2   :  { %4988 = vmatpush3.bf16.msra.mxu0 %v5725_v45 }
0x11b3   :  { %4989 = vmatprep.subr.bf16.mxu0 %v5491_v1 }
0x1280   :  { %v1358_v14 = vpop.f32.mrb[8].mxu0 }
0x1281   :  { %v5186_v20 = vadd.f32 %v5714_v15, %v1358_v14  ;;  %v4390_v62 = vpop.f32.mrb[9].mxu0  ;;  %v1928_v14 = vld [vmem:[#allocation5 + $0x10] sm:$0xff] }
0x1283   :  { %v3811_v22 = vmul.f32 -1.442695, %v5186_v20  ;;  %v1929_v20 = vld [vmem:[#allocation5 + $0x18] sm:$0xff] }
0x1285   :  { %5276 = vpow2.f32 %v3811_v22  ;;  %v5939_v22 = vpack.c.bf16 %v1929_v20, %v1928_v14 }
0x128f   :  { %v5277_v23 = vpop.eup %5276 }
0x1290   :  { %v1365_v25 = vadd.f32 1.0, %v5277_v23  ;;  %v2001_v23 = vld [vmem:[#allocation5 + $0x40] sm:$0xff] }
0x1292   :  { %5278 = vrcp.f32 %v1365_v25  ;;  %v2002_v25 = vld [vmem:[#allocation5 + $0x48] sm:$0xff] }
0x129c   :  { %v5279_v26 = vpop.eup %5278 }
0x129d   :  { %v1368_v43 = vmul.f32 2.0, %v5279_v26  ;;  %v1370_v45 = vmul.f32 %v5279_v26, %v5802_v41 }
0x129f   :  { %v3812_v28 = vadd.f32 -1.0, %v1368_v43  ;;  %v2003_v43 = vld [vmem:[#allocation5 + $0x50] sm:$0xff] }
0x12a1   :  { %1372 = vrot.lane.b32.xlu1 %v3812_v28, %s5496_s13  ;;  %v2004_v28 = vld [vmem:[#allocation5 + $0x58] sm:$0xff] }
0x1313   :  { %v1373_v29 = vpop.permute.xlu1 %1372 }
0x1314   :  { %v1375_v31 = vmul.f32 %v5279_v26, %v1373_v29  ;;  %v5950_v29 = vpack.c.bf16 %v2004_v28, %v2003_v43 }
0x1316   :  { %1377 = vrot.lane.b32.xlu0 %v1375_v31, %s5494_s0  ;;  %v2076_v31 = vld [vmem:[#allocation2] sm:$0xff] }
0x1388   :  { %v1378_v32 = vpop.permute.xlu0 %1377 }
0x1389   :  { %v5868_v34 = vadd.f32 %v1378_v32, %v1370_v45  ;;  %v2077_v45 = vld [vmem:[#allocation2 + $0x8] sm:$0xff]  ;;  %v2078_v32 = vld [vmem:[#allocation2 + $0x10] sm:$0xff] }
0x138b   :  { %5280 = vtanh.f32 %v5868_v34 }
0x1395   :  { %v5281_v35 = vpop.eup %5280 }
0x1396   :  { %1383 = vrot.lane.b32.xlu1 %v5281_v35, %s5496_s13  ;;  %v2079_v35 = vld [vmem:[#allocation2 + $0x18] sm:$0xff] }
0x1408   :  { %v1384_v38 = vpop.permute.xlu1 %1383 }
0x1409   :  { %v1386_v40 = vmul.f32 %v5279_v26, %v1384_v38  ;;  %v5945_v26 = vpack.c.bf16 %v2002_v25, %v2001_v23  ;;  %v5963_v38 = vpack.c.bf16 %v2079_v35, %v2078_v32  ;;  %v6024_v25 = vld [vmem:[%s6275_s3 + $0x8] sm:$0xff] }
0x140b   :  { %1393 = vrot.lane.b32.xlu1 %v1386_v40, %s5494_s0  ;;  %v2080_v40 = vld [vmem:[#allocation2 + $0x20] sm:$0xff] }
0x147d   :  { %v1394_v44 = vpop.permute.xlu1 %1393 }
0x147e   :  { %4400 = vmatmul.mubr.msk.f32.vlgmr.msra.gmra.mrb[6].mxu1 %vm106_vm1, %v1394_v44 }
0x147f   :  { %4943 = vmatpush3.bf16.msra.mxu1 %v5628_v6  ;;  %4410 = vmatprep.mubr.msk.f32.mxu1 %vm5492_vm0, %v5493_v2 }
0x1480   :  { %4944 = vmatprep.subr.bf16.mxu1 %v5491_v1 }
0x1483   :  { %4946 = vmatpush3.bf16.msra.mxu1 %v5631_v9 }
0x1484   :  { %4947 = vmatprep.subr.bf16.mxu1 %v5491_v1 }
0x1486   :  { %4411 = vmatmul.mubr.msk.f32.vlgmr.msra.gmra.mrb[8].mxu1 %vm106_vm1, %v1289_v19  ;;  %v5935_v19 = vpack.c.bf16 %v1927_v18, %v1926_v16  ;;  %v2190_v18 = vld [vmem:[#allocation5 + $0x38] sm:$0xff] }
0x1487   :  { %4949 = vmatpush3.bf16.msra.mxu1 %v5635_v13  ;;  %4421 = vmatprep.mubr.msk.f32.mxu1 %vm5492_vm0, %v5493_v2 }
0x1488   :  { %4950 = vmatprep.subr.bf16.mxu1 %v5491_v1 }
0x148b   :  { %4952 = vmatpush3.bf16.msra.mxu1 %v5641_v17 }
0x148c   :  { %4953 = vmatprep.subr.bf16.mxu1 %v5491_v1 }
0x148e   :  { %4422 = vmatmul.mubr.msk.f32.vlgmr.msra.gmra.mrb[10].mxu1 %vm106_vm1, %v1394_v44  ;;  %v2081_v44 = vld [vmem:[#allocation2 + $0x28] sm:$0xff] }
0x148f   :  { %4955 = vmatpush3.bf16.msra.mxu1 %v5647_v21  ;;  %4456 = vmatprep.mubr.msk.f32.mxu1 %vm5492_vm0, %v5493_v2 }
0x1490   :  { %4956 = vmatprep.subr.bf16.mxu1 %v5491_v1 }
0x1493   :  { %4958 = vmatpush3.bf16.msra.mxu1 %v5652_v24 }
0x1494   :  { %4959 = vmatprep.subr.bf16.mxu1 %v5491_v1 }
0x1497   :  { %4961 = vmatpush3.bf16.msra.mxu1 %v5658_v27 }
0x1498   :  { %4962 = vmatprep.subr.bf16.mxu1 %v5491_v1 }
0x149b   :  { %4964 = vmatpush3.bf16.msra.mxu1 %v5662_v30 }
0x149c   :  { %4965 = vmatprep.subr.bf16.mxu1 %v5491_v1 }
0x149f   :  { %4967 = vmatpush3.bf16.msra.mxu1 %v5666_v33 }
0x14a0   :  { %4968 = vmatprep.subr.bf16.mxu1 %v5491_v1 }
0x14a3   :  { %4970 = vmatpush3.bf16.msra.mxu1 %v5670_v36 }
0x14a4   :  { %4971 = vmatprep.subr.bf16.mxu1 %v5491_v1 }
0x14a7   :  { %4973 = vmatpush3.bf16.msra.mxu1 %v5674_v39 }
0x14a8   :  { %4974 = vmatprep.subr.bf16.mxu1 %v5491_v1 }
0x14ab   :  { %4976 = vmatpush3.bf16.msra.mxu1 %v5678_v42 }
0x14ac   :  { %4977 = vmatprep.subr.bf16.mxu1 %v5491_v1 }
0x1551   :  { %v1463_v6 = vpop.f32.mrb[6].mxu1 }
0x1552   :  { %v1464_v9 = vadd.f32 %v1463_v6, %v5772_v52  ;;  %v4401_v13 = vpop.f32.mrb[7].mxu1  ;;  %v5967_v6 = vpack.c.bf16 %v2081_v44, %v2080_v40 }
0x1553   :  { %v2083_v13 = vld [vmem:[#allocation2 + $0x38] sm:$0xff] }
0x1554   :  { %1468 = vst [vmem:[#allocation10 + $0x10] sm:$0xff] %v1464_v9  ;;  %1469 = vmax.xlane.f32.xlu1 %v1464_v9 }
0x15e1   :  { %v1470_v17 = vpop.xlane.xlu1 %1469 }
0x15e2   :  { %vm1471_vm5 = vcmp.eq.f32.partialorder %v1464_v9, %v1470_v17  ;;  %v2082_v9 = vld [vmem:[#allocation2 + $0x30] sm:$0xff] }
0x15e3   :  { %4457 = vmatmul.mubr.msk.f32.vlgmr.msra.gmra.mrb[8].mxu1 %vm1471_vm5, %v5495_v46  ;;  %v5971_v17 = vpack.c.bf16 %v2083_v13, %v2082_v9 }
0x15e4   :  { %4979 = vmatpush3.bf16.msra.mxu1 %v5697_v4  ;;  %4467 = vmatprep.mubr.msk.f32.mxu1 %vm5492_vm0, %v5493_v2 }
0x15e5   :  { %4980 = vmatprep.subr.bf16.mxu1 %v5491_v1 }
0x15e8   :  { %4982 = vmatpush3.bf16.msra.mxu1 %v5700_v7 }
0x15e9   :  { %5031 = vmatprep.subr.bf16.mxu1 %v5491_v1 }
0x16b6   :  { %v1706_v21 = vpop.f32.mrb[8].mxu1 }
0x16b7   :  { %v5187_v24 = vadd.f32 %v1706_v21, %v5689_v47  ;;  %v4458_v27 = vpop.f32.mrb[9].mxu1  ;;  %v2084_v21 = vld [vmem:[#allocation2 + $0x40] sm:$0xff] }
0x16b9   :  { %v3819_v30 = vmul.f32 -1.442695, %v5187_v24  ;;  %v2085_v24 = vld [vmem:[#allocation2 + $0x48] sm:$0xff] }
0x16ba   :  { %v5975_v27 = vpack.c.bf16 %v2085_v24, %v2084_v21 }
0x16bb   :  { %5282 = vpow2.f32 %v3819_v30  ;;  %v2086_v30 = vld [vmem:[#allocation2 + $0x50] sm:$0xff] }
0x16c5   :  { %v5283_v33 = vpop.eup %5282 }
0x16c6   :  { %v1713_v36 = vadd.f32 1.0, %v5283_v33  ;;  %v2087_v33 = vld [vmem:[#allocation2 + $0x58] sm:$0xff] }
0x16c8   :  { %5284 = vrcp.f32 %v1713_v36  ;;  %v5979_v36 = vpack.c.bf16 %v2087_v33, %v2086_v30 }
0x16d2   :  { %v5285_v39 = vpop.eup %5284 }
0x16d3   :  { %v1716_v42 = vmul.f32 2.0, %v5285_v39  ;;  %v1718_v7 = vmul.f32 %v5285_v39, %v5852_v11 }
0x16d5   :  { %v3820_v4 = vadd.f32 -1.0, %v1716_v42  ;;  %v2089_v42 = vld [vmem:[#allocation2 + $0x68] sm:$0xff] }
0x16d7   :  { %1720 = vrot.lane.b32.xlu0 %v3820_v4, %s5496_s13 }
0x1749   :  { %v1721_v41 = vpop.permute.xlu0 %1720 }
0x174a   :  { %v1723_v48 = vmul.f32 %v5285_v39, %v1721_v41  ;;  %v2090_v41 = vld [vmem:[#allocation2 + $0x70] sm:$0xff] }
0x174c   :  { %1725 = vrot.lane.b32.xlu0 %v1723_v48, %s5494_s0  ;;  %v2091_v48 = vld [vmem:[#allocation2 + $0x78] sm:$0xff] }
0x17be   :  { %v1726_v49 = vpop.permute.xlu0 %1725 }
0x17bf   :  { %v5918_v50 = vadd.f32 %v1726_v49, %v1718_v7  ;;  %v5987_v7 = vpack.c.bf16 %v2091_v48, %v2090_v41  ;;  %v2293_v41 = vld [vmem:[#allocation7 + $0x10] sm:$0xff] }
0x17c1   :  { %5286 = vtanh.f32 %v5918_v50 }
0x17cb   :  { %v5287_v47 = vpop.eup %5286 }
0x17cc   :  { %1731 = vrot.lane.b32.xlu0 %v5287_v47, %s5496_s13 }
0x183e   :  { %v1732_v37 = vpop.permute.xlu0 %1731 }
0x183f   :  { %v1734_v51 = vmul.f32 %v5285_v39, %v1732_v37  ;;  %v2088_v39 = vld [vmem:[#allocation2 + $0x60] sm:$0xff] }
0x1840   :  { %v5983_v4 = vpack.c.bf16 %v2089_v42, %v2088_v39  ;;  %v2291_v39 = vld [vmem:[#allocation7] sm:$0xff]  ;;  %v2292_v42 = vld [vmem:[#allocation7 + $0x8] sm:$0xff] }
0x1841   :  { %1740 = vrot.lane.b32.xlu0 %v1734_v51, %s5494_s0  ;;  %v6033_v48 = vpack.c.bf16 %v2292_v42, %v2291_v39 }
0x18b3   :  { %v1741_v53 = vpop.permute.xlu0 %1740 }
0x18b4   :  { %4468 = vmatmul.mubr.msk.f32.vlgmr.msra.gmra.mrb[10].mxu1 %vm106_vm1, %v1741_v53 }
0x18b5   :  { %4557 = vmatprep.mubr.msk.f32.mxu1 %vm5492_vm0, %v5493_v2  ;;  %5033 = vmatpush3.bf16.msra.mxu1 %v6033_v48 }
0x18b6   :  { %5034 = vmatprep.subr.bf16.mxu1 %v5491_v1 }
0x1987   :  { %v1810_v54 = vpop.f32.mrb[10].mxu1 }
0x1988   :  { %v5188_v55 = vadd.f32 %v5714_v15, %v1810_v54  ;;  %v4469_v56 = vpop.f32.mrb[11].mxu1 }
0x198a   :  { %v3822_v57 = vmul.f32 -1.442695, %v5188_v55 }
0x198c   :  { %5288 = vpow2.f32 %v3822_v57 }
0x1996   :  { %v5289_v58 = vpop.eup %5288 }
0x1997   :  { %v1817_v59 = vadd.f32 1.0, %v5289_v58 }
0x1999   :  { %5290 = vrcp.f32 %v1817_v59 }
0x19a3   :  { %v5291_v60 = vpop.eup %5290 }
0x19a4   :  { %v1820_v61 = vmul.f32 2.0, %v5291_v60  ;;  %v1822_v5 = vmul.f32 %v5291_v60, %v5868_v34  ;;  %v5960_v34 = vpack.c.bf16 %v2077_v45, %v2076_v31 }
0x19a6   :  { %v3823_v63 = vadd.f32 -1.0, %v1820_v61 }
0x19a8   :  { %1824 = vrot.lane.b32.xlu0 %v3823_v63, %s5496_s13 }
0x1a1a   :  { %v1825_v0 = vpop.permute.xlu0 %1824 }
0x1a1b   :  { %v1827_v3 = vmul.f32 %v5291_v60, %v1825_v0 }
0x1a1d   :  { %1829 = vrot.lane.b32.xlu0 %v1827_v3, %s5494_s0 }
0x1a8f   :  { %v1830_v8 = vpop.permute.xlu0 %1829 }
0x1a90   :  { %v5930_v10 = vadd.f32 %v1830_v8, %v1822_v5 }
0x1a92   :  { %5292 = vtanh.f32 %v5930_v10 }
0x1a9c   :  { %v5293_v15 = vpop.eup %5292 }
0x1a9d   :  { %1835 = vrot.lane.b32.xlu0 %v5293_v15, %s5496_s13  ;;  %v2187_v15 = vld [vmem:[#allocation5 + $0x20] sm:$0xff] }
0x1b0f   :  { %v1836_v11 = vpop.permute.xlu0 %1835 }
0x1b10   :  { %v1838_v12 = vmul.f32 %v5291_v60, %v1836_v11  ;;  %v2188_v11 = vld [vmem:[#allocation5 + $0x28] sm:$0xff] }
0x1b11   :  { %v6008_v16 = vpack.c.bf16 %v2188_v11, %v2187_v15 }
0x1b12   :  { %1845 = vrot.lane.b32.xlu1 %v1838_v12, %s5494_s0  ;;  %v2189_v12 = vld [vmem:[#allocation5 + $0x30] sm:$0xff] }
0x1b13   :  { %v6011_v14 = vpack.c.bf16 %v2190_v18, %v2189_v12 }
0x1b84   :  { %v1846_v62 = vpop.permute.xlu1 %1845 }
0x1b85   :  { %4479 = vmatmul.mubr.msk.f32.vlgmr.msra.gmra.mrb[10].mxu0 %vm106_vm1, %v1846_v62 }
0x1b86   :  { %4991 = vmatpush3.bf16.msra.mxu0 %v5935_v19  ;;  %4489 = vmatprep.mubr.msk.f32.mxu0 %vm5492_vm0, %v5493_v2 }
0x1b87   :  { %4992 = vmatprep.subr.bf16.mxu0 %v5491_v1 }
0x1b8a   :  { %4994 = vmatpush3.bf16.msra.mxu0 %v5939_v22 }
0x1b8b   :  { %4995 = vmatprep.subr.bf16.mxu0 %v5491_v1 }
0x1b8d   :  { %4490 = vmatmul.mubr.msk.f32.vlgmr.msra.gmra.mrb[12].mxu0 %vm106_vm1, %v1741_v53  ;;  %v5999_v53 = vld [vmem:[%s6275_s3] sm:$0xff] }
0x1b8e   :  { %4997 = vmatpush3.bf16.msra.mxu0 %v5945_v26  ;;  %4500 = vmatprep.mubr.msk.f32.mxu0 %vm5492_vm0, %v5493_v2 }
0x1b8f   :  { %4998 = vmatprep.subr.bf16.mxu0 %v5491_v1 }
0x1b92   :  { %5000 = vmatpush3.bf16.msra.mxu0 %v5950_v29 }
0x1b93   :  { %5001 = vmatprep.subr.bf16.mxu0 %v5491_v1 }
0x1b95   :  { %4501 = vmatmul.mubr.msk.f32.vlgmr.msra.gmra.mrb[14].mxu0 %vm106_vm1, %v1846_v62 }
0x1b96   :  { %4535 = vmatprep.mubr.msk.f32.mxu0 %vm5492_vm0, %v5493_v2  ;;  %5003 = vmatpush3.bf16.msra.mxu0 %v5960_v34 }
0x1b97   :  { %5004 = vmatprep.subr.bf16.mxu0 %v5491_v1 }
0x1b9a   :  { %5006 = vmatpush3.bf16.msra.mxu0 %v5963_v38 }
0x1b9b   :  { %5007 = vmatprep.subr.bf16.mxu0 %v5491_v1 }
0x1b9e   :  { %5009 = vmatpush3.bf16.msra.mxu0 %v5967_v6 }
0x1b9f   :  { %5010 = vmatprep.subr.bf16.mxu0 %v5491_v1 }
0x1ba2   :  { %5012 = vmatpush3.bf16.msra.mxu0 %v5971_v17 }
0x1ba3   :  { %5013 = vmatprep.subr.bf16.mxu0 %v5491_v1 }
0x1ba6   :  { %5015 = vmatpush3.bf16.msra.mxu0 %v5975_v27 }
0x1ba7   :  { %5016 = vmatprep.subr.bf16.mxu0 %v5491_v1 }
0x1baa   :  { %5018 = vmatpush3.bf16.msra.mxu0 %v5979_v36 }
0x1bab   :  { %5019 = vmatprep.subr.bf16.mxu0 %v5491_v1 }
0x1bae   :  { %5021 = vmatpush3.bf16.msra.mxu0 %v5983_v4 }
0x1baf   :  { %5022 = vmatprep.subr.bf16.mxu0 %v5491_v1 }
0x1bb2   :  { %5024 = vmatpush3.bf16.msra.mxu0 %v5987_v7 }
0x1bb3   :  { %5025 = vmatprep.subr.bf16.mxu0 %v5491_v1 }
0x1c58   :  { %v1915_v49 = vpop.f32.mrb[10].mxu0 }
0x1c59   :  { %v1916_v47 = vadd.f32 %v1915_v49, %v5772_v52  ;;  %v4480_v37 = vpop.f32.mrb[11].mxu0  ;;  %v2294_v49 = vld [vmem:[#allocation7 + $0x18] sm:$0xff] }
0x1c5b   :  { %1920 = vst [vmem:[#allocation10 + $0x18] sm:$0xff] %v1916_v47  ;;  %1921 = vmax.xlane.f32.xlu0 %v1916_v47 }
0x1ce8   :  { %v1922_v51 = vpop.xlane.xlu0 %1921 }
0x1ce9   :  { %vm1923_vm6 = vcmp.eq.f32.partialorder %v1916_v47, %v1922_v51  ;;  %v6036_v47 = vpack.c.bf16 %v2294_v49, %v2293_v41 }
0x1cea   :  { %4536 = vmatmul.mubr.msk.f32.vlgmr.msra.gmra.mrb[12].mxu0 %vm1923_vm6, %v5495_v46 }
0x1ceb   :  { %4546 = vmatprep.mubr.msk.f32.mxu0 %vm5492_vm0, %v5493_v2  ;;  %5027 = vmatpush3.bf16.msra.mxu0 %v6008_v16 }
0x1cec   :  { %5028 = vmatprep.subr.bf16.mxu0 %v5491_v1  ;;  %5036 = vmatpush3.bf16.msra.mxu1 %v6036_v47 }
0x1ced   :  { %5037 = vmatprep.subr.bf16.mxu1 %v5491_v1 }
0x1cef   :  { %5030 = vmatpush3.bf16.msra.mxu0 %v6011_v14 }
0x1cf0   :  { %5079 = vmatprep.subr.bf16.mxu0 %v5491_v1 }
0x1dbd   :  { %v2158_v54 = vpop.f32.mrb[12].mxu0 }
0x1dbe   :  { %v5189_v55 = vadd.f32 %v2158_v54, %v5999_v53  ;;  %v4537_v56 = vpop.f32.mrb[13].mxu0 }
0x1dc0   :  { %v3830_v52 = vmul.f32 -1.442695, %v5189_v55  ;;  %v6083_v55 = vld [vmem:[%s6277_s5] sm:$0xff]  ;;  %s5497_s5 = smov 96  }
0x1dc2   :  { %5294 = vpow2.f32 %v3830_v52 }
0x1dcc   :  { %v5295_v57 = vpop.eup %5294 }
0x1dcd   :  { %v2165_v58 = vadd.f32 1.0, %v5295_v57 }
0x1dcf   :  { %5296 = vrcp.f32 %v2165_v58 }
0x1dd9   :  { %v5297_v59 = vpop.eup %5296 }
0x1dda   :  { %v2168_v60 = vmul.f32 2.0, %v5297_v59  ;;  %v2170_v3 = vmul.f32 %v5297_v59, %v5918_v50 }
0x1ddc   :  { %v3831_v61 = vadd.f32 -1.0, %v2168_v60 }
0x1dde   :  { %2172 = vrot.lane.b32.xlu1 %v3831_v61, %s5496_s13 }
0x1e50   :  { %v2173_v63 = vpop.permute.xlu1 %2172 }
0x1e51   :  { %v2175_v0 = vmul.f32 %v5297_v59, %v2173_v63 }
0x1e53   :  { %2177 = vrot.lane.b32.xlu1 %v2175_v0, %s5494_s0 }
0x1ec5   :  { %v2178_v5 = vpop.permute.xlu1 %2177 }
0x1ec6   :  { %v6005_v8 = vadd.f32 %v2178_v5, %v2170_v3 }
0x1ec8   :  { %5298 = vtanh.f32 %v6005_v8 }
0x1ed2   :  { %v5299_v50 = vpop.eup %5298 }
0x1ed3   :  { %2183 = vrot.lane.b32.xlu1 %v5299_v50, %s5496_s13 }
0x1f45   :  { %v2184_v20 = vpop.permute.xlu1 %2183 }
0x1f46   :  { %v2186_v62 = vmul.f32 %v5297_v59, %v2184_v20 }
0x1f48   :  { %2192 = vrot.lane.b32.xlu1 %v2186_v62, %s5494_s0 }
0x1fba   :  { %v2193_v23 = vpop.permute.xlu1 %2192 }
0x1fbb   :  { %4547 = vmatmul.mubr.msk.f32.vlgmr.msra.gmra.mrb[14].mxu0 %vm106_vm1, %v2193_v23 }
0x1fbc   :  { %4636 = vmatprep.mubr.msk.f32.mxu0 %vm5492_vm0, %v5493_v2  ;;  %5081 = vmatpush3.bf16.msra.mxu0 %v6033_v48 }
0x1fbd   :  { %5082 = vmatprep.subr.bf16.mxu0 %v5491_v1 }
0x1fc0   :  { %5084 = vmatpush3.bf16.msra.mxu0 %v6036_v47 }
0x1fc1   :  { %5085 = vmatprep.subr.bf16.mxu0 %v5491_v1 }
0x208e   :  { %v2262_v43 = vpop.f32.mrb[14].mxu0 }
0x208f   :  { %v5190_v28 = vadd.f32 %v6024_v25, %v2262_v43  ;;  %v4548_v31 = vpop.f32.mrb[15].mxu0 }
0x2091   :  { %v3833_v45 = vmul.f32 -1.442695, %v5190_v28 }
0x2093   :  { %5300 = vpow2.f32 %v3833_v45 }
0x209d   :  { %v5301_v32 = vpop.eup %5300 }
0x209e   :  { %v2269_v35 = vadd.f32 1.0, %v5301_v32 }
0x20a0   :  { %5302 = vrcp.f32 %v2269_v35 }
0x20aa   :  { %v5303_v40 = vpop.eup %5302 }
0x20ab   :  { %v2272_v44 = vmul.f32 2.0, %v5303_v40  ;;  %v2274_v24 = vmul.f32 %v5303_v40, %v5930_v10 }
0x20ad   :  { %v3834_v9 = vadd.f32 -1.0, %v2272_v44 }
0x20af   :  { %2276 = vrot.lane.b32.xlu1 %v3834_v9, %s5496_s13 }
0x2121   :  { %v2277_v13 = vpop.permute.xlu1 %2276 }
0x2122   :  { %v2279_v21 = vmul.f32 %v5303_v40, %v2277_v13 }
0x2124   :  { %2281 = vrot.lane.b32.xlu0 %v2279_v21, %s5494_s0 }
0x2196   :  { %v2282_v30 = vpop.permute.xlu0 %2281 }
0x2197   :  { %v6030_v33 = vadd.f32 %v2282_v30, %v2274_v24 }
0x2199   :  { %5304 = vtanh.f32 %v6030_v33 }
0x21a3   :  { %v5305_v10 = vpop.eup %5304 }
0x21a4   :  { %2287 = vrot.lane.b32.xlu1 %v5305_v10, %s5496_s13 }
0x2216   :  { %v2288_v37 = vpop.permute.xlu1 %2287 }
0x2217   :  { %v2290_v51 = vmul.f32 %v5303_v40, %v2288_v37 }
0x2219   :  { %2297 = vrot.lane.b32.xlu1 %v2290_v51, %s5494_s0 }
0x228b   :  { %v2298_v54 = vpop.permute.xlu1 %2297 }
0x228c   :  { %4558 = vmatmul.mubr.msk.f32.vlgmr.msra.gmra.mrb[12].mxu1 %vm106_vm1, %v2298_v54 }
0x228d   :  { %5039 = vmatpush3.bf16.msra.mxu1 %v5935_v19  ;;  %4568 = vmatprep.mubr.msk.f32.mxu1 %vm5492_vm0, %v5493_v2 }
0x228e   :  { %5040 = vmatprep.subr.bf16.mxu1 %v5491_v1 }
0x2291   :  { %5042 = vmatpush3.bf16.msra.mxu1 %v5939_v22 }
0x2292   :  { %5043 = vmatprep.subr.bf16.mxu1 %v5491_v1 }
0x2294   :  { %4569 = vmatmul.mubr.msk.f32.vlgmr.msra.gmra.mrb[14].mxu1 %vm106_vm1, %v2193_v23 }
0x2295   :  { %5045 = vmatpush3.bf16.msra.mxu1 %v5945_v26  ;;  %4579 = vmatprep.mubr.msk.f32.mxu1 %vm5492_vm0, %v5493_v2 }
0x2296   :  { %5046 = vmatprep.subr.bf16.mxu1 %v5491_v1 }
0x2299   :  { %5048 = vmatpush3.bf16.msra.mxu1 %v5950_v29 }
0x229a   :  { %5049 = vmatprep.subr.bf16.mxu1 %v5491_v1 }
0x229c   :  { %4580 = vmatmul.mubr.msk.f32.vlgmr.msra.gmra.mrb[16].mxu1 %vm106_vm1, %v2298_v54 }
0x229d   :  { %5051 = vmatpush3.bf16.msra.mxu1 %v5960_v34  ;;  %4614 = vmatprep.mubr.msk.f32.mxu1 %vm5492_vm0, %v5493_v2 }
0x229e   :  { %5052 = vmatprep.subr.bf16.mxu1 %v5491_v1 }
0x22a1   :  { %5054 = vmatpush3.bf16.msra.mxu1 %v5963_v38 }
0x22a2   :  { %5055 = vmatprep.subr.bf16.mxu1 %v5491_v1 }
0x22a5   :  { %5057 = vmatpush3.bf16.msra.mxu1 %v5967_v6 }
0x22a6   :  { %5058 = vmatprep.subr.bf16.mxu1 %v5491_v1 }
0x22a9   :  { %5060 = vmatpush3.bf16.msra.mxu1 %v5971_v17 }
0x22aa   :  { %5061 = vmatprep.subr.bf16.mxu1 %v5491_v1 }
0x22ad   :  { %5063 = vmatpush3.bf16.msra.mxu1 %v5975_v27 }
0x22ae   :  { %5064 = vmatprep.subr.bf16.mxu1 %v5491_v1 }
0x22b1   :  { %5066 = vmatpush3.bf16.msra.mxu1 %v5979_v36 }
0x22b2   :  { %5067 = vmatprep.subr.bf16.mxu1 %v5491_v1 }
0x22b5   :  { %5069 = vmatpush3.bf16.msra.mxu1 %v5983_v4 }
0x22b6   :  { %5070 = vmatprep.subr.bf16.mxu1 %v5491_v1 }
0x22b9   :  { %5072 = vmatpush3.bf16.msra.mxu1 %v5987_v7 }
0x22ba   :  { %5073 = vmatprep.subr.bf16.mxu1 %v5491_v1 }
0x235f   :  { %v2367_v56 = vpop.f32.mrb[12].mxu1 }
0x2360   :  { %v2368_v52 = vadd.f32 %v2367_v56, %v6083_v55  ;;  %v4559_v57 = vpop.f32.mrb[13].mxu1 }
0x2362   :  { %2372 = vst [vmem:[#allocation10 + $0x20] sm:$0xff] %v2368_v52  ;;  %2373 = vmax.xlane.f32.xlu1 %v2368_v52 }
0x23ef   :  { %v2374_v58 = vpop.xlane.xlu1 %2373 }
0x23f0   :  { %vm2375_vm7 = vcmp.eq.f32.partialorder %v2368_v52, %v2374_v58 }
0x23f1   :  { %4615 = vmatmul.mubr.msk.f32.vlgmr.msra.gmra.mrb[14].mxu1 %vm2375_vm7, %v5495_v46 }
0x23f2   :  { %5075 = vmatpush3.bf16.msra.mxu1 %v6008_v16  ;;  %4625 = vmatprep.mubr.msk.f32.mxu1 %vm5492_vm0, %v5493_v2 }
0x23f3   :  { %5076 = vmatprep.subr.bf16.mxu1 %v5491_v1 }
0x23f6   :  { %5078 = vmatpush3.bf16.msra.mxu1 %v6011_v14 }
0x23f7   :  { %5127 = vmatprep.subr.bf16.mxu1 %v5491_v1 }
0x24c4   :  { %v2610_v59 = vpop.f32.mrb[14].mxu1 }
0x24c5   :  { %v5191_v60 = vadd.f32 %v2610_v59, %v5999_v53  ;;  %v4616_v61 = vpop.f32.mrb[15].mxu1 }
0x24c7   :  { %v3841_v63 = vmul.f32 -1.442695, %v5191_v60 }
0x24c9   :  { %5306 = vpow2.f32 %v3841_v63 }
0x24d3   :  { %v5307_v0 = vpop.eup %5306 }
0x24d4   :  { %v2617_v3 = vadd.f32 1.0, %v5307_v0 }
0x24d6   :  { %5308 = vrcp.f32 %v2617_v3 }
0x24e0   :  { %v5309_v5 = vpop.eup %5308 }
0x24e1   :  { %v2620_v15 = vmul.f32 2.0, %v5309_v5  ;;  %v2622_v50 = vmul.f32 %v5309_v5, %v6005_v8 }
0x24e3   :  { %v3842_v11 = vadd.f32 -1.0, %v2620_v15 }
0x24e5   :  { %2624 = vrot.lane.b32.xlu0 %v3842_v11, %s5496_s13 }
0x2557   :  { %v2625_v12 = vpop.permute.xlu0 %2624 }
0x2558   :  { %v2627_v18 = vmul.f32 %v5309_v5, %v2625_v12 }
0x255a   :  { %2629 = vrot.lane.b32.xlu0 %v2627_v18, %s5494_s0 }
0x25cc   :  { %v2630_v20 = vpop.permute.xlu0 %2629 }
0x25cd   :  { %v6097_v62 = vadd.f32 %v2630_v20, %v2622_v50 }
0x25cf   :  { %5310 = vtanh.f32 %v6097_v62 }
0x25d9   :  { %v5311_v23 = vpop.eup %5310 }
0x25da   :  { %2635 = vrot.lane.b32.xlu0 %v5311_v23, %s5496_s13 }
0x264c   :  { %v2636_v43 = vpop.permute.xlu0 %2635 }
0x264d   :  { %v2638_v28 = vmul.f32 %v5309_v5, %v2636_v43 }
0x264f   :  { %2644 = vrot.lane.b32.xlu0 %v2638_v28, %s5494_s0 }
0x26c1   :  { %v2645_v31 = vpop.permute.xlu0 %2644 }
0x26c2   :  { %4626 = vmatmul.mubr.msk.f32.vlgmr.msra.gmra.mrb[16].mxu1 %vm106_vm1, %v2645_v31 }
0x26c3   :  { %5129 = vmatpush3.bf16.msra.mxu1 %v6033_v48  ;;  %4715 = vmatprep.mubr.msk.f32.mxu1 %vm5492_vm0, %v5493_v2 }
0x26c4   :  { %5130 = vmatprep.subr.bf16.mxu1 %v5491_v1 }
0x26c7   :  { %5132 = vmatpush3.bf16.msra.mxu1 %v6036_v47 }
0x26c8   :  { %5133 = vmatprep.subr.bf16.mxu1 %v5491_v1 }
0x2795   :  { %v2714_v8 = vpop.f32.mrb[16].mxu1 }
0x2796   :  { %v5192_v45 = vadd.f32 %v6024_v25, %v2714_v8  ;;  %v4627_v32 = vpop.f32.mrb[17].mxu1 }
0x2798   :  { %v3844_v35 = vmul.f32 -1.442695, %v5192_v45 }
0x279a   :  { %5312 = vpow2.f32 %v3844_v35 }
0x27a4   :  { %v5313_v40 = vpop.eup %5312 }
0x27a5   :  { %v2721_v44 = vadd.f32 1.0, %v5313_v40 }
0x27a7   :  { %5314 = vrcp.f32 %v2721_v44 }
0x27b1   :  { %v5315_v9 = vpop.eup %5314 }
0x27b2   :  { %v2724_v13 = vmul.f32 2.0, %v5315_v9  ;;  %v2726_v39 = vmul.f32 %v5315_v9, %v6030_v33 }
0x27b4   :  { %v3845_v21 = vadd.f32 -1.0, %v2724_v13 }
0x27b6   :  { %2728 = vrot.lane.b32.xlu0 %v3845_v21, %s5496_s13 }
0x2828   :  { %v2729_v24 = vpop.permute.xlu0 %2728 }
0x2829   :  { %v2731_v30 = vmul.f32 %v5315_v9, %v2729_v24 }
0x282b   :  { %2733 = vrot.lane.b32.xlu0 %v2731_v30, %s5494_s0 }
0x289d   :  { %v2734_v42 = vpop.permute.xlu0 %2733 }
0x289e   :  { %v6113_v41 = vadd.f32 %v2734_v42, %v2726_v39 }
0x28a0   :  { %5316 = vtanh.f32 %v6113_v41 }
0x28aa   :  { %v5317_v49 = vpop.eup %5316 }
0x28ab   :  { %2739 = vrot.lane.b32.xlu0 %v5317_v49, %s5496_s13 }
0x291d   :  { %v2740_v10 = vpop.permute.xlu0 %2739 }
0x291e   :  { %v2742_v37 = vmul.f32 %v5315_v9, %v2740_v10 }
0x2920   :  { %2749 = vrot.lane.b32.xlu1 %v2742_v37, %s5494_s0 }
0x2992   :  { %v2750_v51 = vpop.permute.xlu1 %2749 }
0x2993   :  { %4637 = vmatmul.mubr.msk.f32.vlgmr.msra.gmra.mrb[16].mxu0 %vm106_vm1, %v2750_v51 }
0x2994   :  { %5087 = vmatpush3.bf16.msra.mxu0 %v5935_v19  ;;  %4647 = vmatprep.mubr.msk.f32.mxu0 %vm5492_vm0, %v5493_v2 }
0x2995   :  { %5088 = vmatprep.subr.bf16.mxu0 %v5491_v1 }
0x2998   :  { %5090 = vmatpush3.bf16.msra.mxu0 %v5939_v22 }
0x2999   :  { %5091 = vmatprep.subr.bf16.mxu0 %v5491_v1 }
0x299b   :  { %4648 = vmatmul.mubr.msk.f32.vlgmr.msra.gmra.mrb[18].mxu0 %vm106_vm1, %v2645_v31 }
0x299c   :  { %5093 = vmatpush3.bf16.msra.mxu0 %v5945_v26  ;;  %4658 = vmatprep.mubr.msk.f32.mxu0 %vm5492_vm0, %v5493_v2 }
0x299d   :  { %5094 = vmatprep.subr.bf16.mxu0 %v5491_v1 }
0x29a0   :  { %5096 = vmatpush3.bf16.msra.mxu0 %v5950_v29 }
0x29a1   :  { %5097 = vmatprep.subr.bf16.mxu0 %v5491_v1 }
0x29a3   :  { %4659 = vmatmul.mubr.msk.f32.vlgmr.msra.gmra.mrb[20].mxu0 %vm106_vm1, %v2750_v51 }
0x29a4   :  { %5099 = vmatpush3.bf16.msra.mxu0 %v5960_v34  ;;  %4693 = vmatprep.mubr.msk.f32.mxu0 %vm5492_vm0, %v5493_v2 }
0x29a5   :  { %5100 = vmatprep.subr.bf16.mxu0 %v5491_v1 }
0x29a8   :  { %5102 = vmatpush3.bf16.msra.mxu0 %v5963_v38 }
0x29a9   :  { %5103 = vmatprep.subr.bf16.mxu0 %v5491_v1 }
0x29ac   :  { %5105 = vmatpush3.bf16.msra.mxu0 %v5967_v6 }
0x29ad   :  { %5106 = vmatprep.subr.bf16.mxu0 %v5491_v1 }
0x29b0   :  { %5108 = vmatpush3.bf16.msra.mxu0 %v5971_v17 }
0x29b1   :  { %5109 = vmatprep.subr.bf16.mxu0 %v5491_v1 }
0x29b4   :  { %5111 = vmatpush3.bf16.msra.mxu0 %v5975_v27 }
0x29b5   :  { %5112 = vmatprep.subr.bf16.mxu0 %v5491_v1 }
0x29b8   :  { %5114 = vmatpush3.bf16.msra.mxu0 %v5979_v36 }
0x29b9   :  { %5115 = vmatprep.subr.bf16.mxu0 %v5491_v1 }
0x29bc   :  { %5117 = vmatpush3.bf16.msra.mxu0 %v5983_v4 }
0x29bd   :  { %5118 = vmatprep.subr.bf16.mxu0 %v5491_v1 }
0x29c0   :  { %5120 = vmatpush3.bf16.msra.mxu0 %v5987_v7 }
0x29c1   :  { %5121 = vmatprep.subr.bf16.mxu0 %v5491_v1 }
0x2a66   :  { %v2819_v33 = vpop.f32.mrb[16].mxu0 }
0x2a67   :  { %v2820_v54 = vadd.f32 %v2819_v33, %v6083_v55  ;;  %v4638_v56 = vpop.f32.mrb[17].mxu0 }
0x2a69   :  { %2824 = vst [vmem:[#allocation10 + $0x28] sm:$0xff] %v2820_v54  ;;  %2825 = vmax.xlane.f32.xlu0 %v2820_v54 }
0x2af6   :  { %v2826_v52 = vpop.xlane.xlu0 %2825 }
0x2af7   :  { %vm2827_vm8 = vcmp.eq.f32.partialorder %v2820_v54, %v2826_v52 }
0x2af8   :  { %4694 = vmatmul.mubr.msk.f32.vlgmr.msra.gmra.mrb[18].mxu0 %vm2827_vm8, %v5495_v46 }
0x2af9   :  { %5123 = vmatpush3.bf16.msra.mxu0 %v6008_v16  ;;  %4704 = vmatprep.mubr.msk.f32.mxu0 %vm5492_vm0, %v5493_v2 }
0x2afa   :  { %5124 = vmatprep.subr.bf16.mxu0 %v5491_v1 }
0x2afd   :  { %5126 = vmatpush3.bf16.msra.mxu0 %v6011_v14 }
0x2afe   :  { %5175 = vmatprep.subr.bf16.mxu0 %v5491_v1 }
0x2bcb   :  { %v3062_v57 = vpop.f32.mrb[18].mxu0 }
0x2bcc   :  { %v5193_v58 = vadd.f32 %v3062_v57, %v5999_v53  ;;  %v4695_v59 = vpop.f32.mrb[19].mxu0 }
0x2bce   :  { %v3852_v60 = vmul.f32 -1.442695, %v5193_v58 }
0x2bd0   :  { %5318 = vpow2.f32 %v3852_v60 }
0x2bda   :  { %v5319_v61 = vpop.eup %5318 }
0x2bdb   :  { %v3069_v63 = vadd.f32 1.0, %v5319_v61 }
0x2bdd   :  { %5320 = vrcp.f32 %v3069_v63 }
0x2be7   :  { %v5321_v0 = vpop.eup %5320 }
0x2be8   :  { %v3072_v3 = vmul.f32 2.0, %v5321_v0  ;;  %v3074_v12 = vmul.f32 %v5321_v0, %v6097_v62 }
0x2bea   :  { %v3853_v5 = vadd.f32 -1.0, %v3072_v3 }
0x2bec   :  { %3076 = vrot.lane.b32.xlu1 %v3853_v5, %s5496_s13 }
0x2c5e   :  { %v3077_v15 = vpop.permute.xlu1 %3076 }
0x2c5f   :  { %v3079_v11 = vmul.f32 %v5321_v0, %v3077_v15 }
0x2c61   :  { %3081 = vrot.lane.b32.xlu1 %v3079_v11, %s5494_s0 }
0x2cd3   :  { %v3082_v18 = vpop.permute.xlu1 %3081 }
0x2cd4   :  { %v6163_v50 = vadd.f32 %v3082_v18, %v3074_v12 }
0x2cd6   :  { %5322 = vtanh.f32 %v6163_v50 }
0x2ce0   :  { %v5323_v20 = vpop.eup %5322 }
0x2ce1   :  { %3087 = vrot.lane.b32.xlu1 %v5323_v20, %s5496_s13 }
0x2d53   :  { %v3088_v23 = vpop.permute.xlu1 %3087 }
0x2d54   :  { %v3090_v43 = vmul.f32 %v5321_v0, %v3088_v23 }
0x2d56   :  { %3096 = vrot.lane.b32.xlu1 %v3090_v43, %s5494_s0 }
0x2dc8   :  { %v3097_v28 = vpop.permute.xlu1 %3096 }
0x2dc9   :  { %4705 = vmatmul.mubr.msk.f32.vlgmr.msra.gmra.mrb[20].mxu0 %vm106_vm1, %v3097_v28 }
0x2dca   :  { %5177 = vmatpush3.bf16.msra.mxu0 %v6033_v48  ;;  %4794 = vmatprep.mubr.msk.f32.mxu0 %vm5492_vm0, %v5493_v2 }
0x2dcb   :  { %5178 = vmatprep.subr.bf16.mxu0 %v5491_v1 }
0x2dce   :  { %5180 = vmatpush3.bf16.msra.mxu0 %v6036_v47 }
0x2e9c   :  { %v3166_v62 = vpop.f32.mrb[20].mxu0 }
0x2e9d   :  { %v5194_v31 = vadd.f32 %v6024_v25, %v3166_v62  ;;  %v4706_v8 = vpop.f32.mrb[21].mxu0 }
0x2e9f   :  { %v3855_v45 = vmul.f32 -1.442695, %v5194_v31 }
0x2ea1   :  { %5324 = vpow2.f32 %v3855_v45 }
0x2eab   :  { %v5325_v32 = vpop.eup %5324 }
0x2eac   :  { %v3173_v35 = vadd.f32 1.0, %v5325_v32 }
0x2eae   :  { %5326 = vrcp.f32 %v3173_v35 }
0x2eb8   :  { %v5327_v40 = vpop.eup %5326 }
0x2eb9   :  { %v3176_v44 = vmul.f32 2.0, %v5327_v40  ;;  %v3178_v47 = vmul.f32 %v5327_v40, %v6113_v41 }
0x2ebb   :  { %v3856_v9 = vadd.f32 -1.0, %v3176_v44 }
0x2ebd   :  { %3180 = vrot.lane.b32.xlu1 %v3856_v9, %s5496_s13 }
0x2f2f   :  { %v3181_v48 = vpop.permute.xlu1 %3180 }
0x2f30   :  { %v3183_v13 = vmul.f32 %v5327_v40, %v3181_v48 }
0x2f32   :  { %3185 = vrot.lane.b32.xlu0 %v3183_v13, %s5494_s0 }
0x2fa4   :  { %v3186_v21 = vpop.permute.xlu0 %3185 }
0x2fa5   :  { %v6178_v24 = vadd.f32 %v3186_v21, %v3178_v47 }
0x2fa7   :  { %5328 = vtanh.f32 %v6178_v24 }
0x2fb1   :  { %v5329_v30 = vpop.eup %5328 }
0x2fb2   :  { %3191 = vrot.lane.b32.xlu1 %v5329_v30, %s5496_s13 }
0x3024   :  { %v3192_v39 = vpop.permute.xlu1 %3191 }
0x3025   :  { %v3194_v42 = vmul.f32 %v5327_v40, %v3192_v39 }
0x3027   :  { %3201 = vrot.lane.b32.xlu1 %v3194_v42, %s5494_s0 }
0x3099   :  { %v3202_v49 = vpop.permute.xlu1 %3201 }
0x309a   :  { %4716 = vmatmul.mubr.msk.f32.vlgmr.msra.gmra.mrb[18].mxu1 %vm106_vm1, %v3202_v49 }
0x309b   :  { %5135 = vmatpush3.bf16.msra.mxu1 %v5935_v19  ;;  %4726 = vmatprep.mubr.msk.f32.mxu1 %vm5492_vm0, %v5493_v2 }
0x309c   :  { %5136 = vmatprep.subr.bf16.mxu1 %v5491_v1 }
0x309f   :  { %5138 = vmatpush3.bf16.msra.mxu1 %v5939_v22 }
0x30a0   :  { %5139 = vmatprep.subr.bf16.mxu1 %v5491_v1 }
0x30a2   :  { %4727 = vmatmul.mubr.msk.f32.vlgmr.msra.gmra.mrb[20].mxu1 %vm106_vm1, %v3097_v28 }
0x30a3   :  { %5141 = vmatpush3.bf16.msra.mxu1 %v5945_v26  ;;  %4737 = vmatprep.mubr.msk.f32.mxu1 %vm5492_vm0, %v5493_v2 }
0x30a4   :  { %5142 = vmatprep.subr.bf16.mxu1 %v5491_v1 }
0x30a7   :  { %5144 = vmatpush3.bf16.msra.mxu1 %v5950_v29 }
0x30a8   :  { %5145 = vmatprep.subr.bf16.mxu1 %v5491_v1 }
0x30aa   :  { %4738 = vmatmul.mubr.msk.f32.vlgmr.msra.gmra.mrb[22].mxu1 %vm106_vm1, %v3202_v49 }
0x30ab   :  { %5147 = vmatpush3.bf16.msra.mxu1 %v5960_v34  ;;  %4772 = vmatprep.mubr.msk.f32.mxu1 %vm5492_vm0, %v5493_v2 }
0x30ac   :  { %5148 = vmatprep.subr.bf16.mxu1 %v5491_v1 }
0x30af   :  { %5150 = vmatpush3.bf16.msra.mxu1 %v5963_v38 }
0x30b0   :  { %5151 = vmatprep.subr.bf16.mxu1 %v5491_v1 }
0x30b3   :  { %5153 = vmatpush3.bf16.msra.mxu1 %v5967_v6 }
0x30b4   :  { %5154 = vmatprep.subr.bf16.mxu1 %v5491_v1 }
0x30b7   :  { %5156 = vmatpush3.bf16.msra.mxu1 %v5971_v17 }
0x30b8   :  { %5157 = vmatprep.subr.bf16.mxu1 %v5491_v1 }
0x30bb   :  { %5159 = vmatpush3.bf16.msra.mxu1 %v5975_v27 }
0x30bc   :  { %5160 = vmatprep.subr.bf16.mxu1 %v5491_v1 }
0x30bf   :  { %5162 = vmatpush3.bf16.msra.mxu1 %v5979_v36 }
0x30c0   :  { %5163 = vmatprep.subr.bf16.mxu1 %v5491_v1 }
0x30c3   :  { %5165 = vmatpush3.bf16.msra.mxu1 %v5983_v4 }
0x30c4   :  { %5166 = vmatprep.subr.bf16.mxu1 %v5491_v1 }
0x30c7   :  { %5168 = vmatpush3.bf16.msra.mxu1 %v5987_v7 }
0x30c8   :  { %5169 = vmatprep.subr.bf16.mxu1 %v5491_v1 }
0x316d   :  { %v3271_v19 = vpop.f32.mrb[18].mxu1 }
0x316e   :  { %v3272_v22 = vadd.f32 %v3271_v19, %v6083_v55  ;;  %v4717_v26 = vpop.f32.mrb[19].mxu1 }
0x3170   :  { %3276 = vst [vmem:[#allocation10 + $0x30] sm:$0xff] %v3272_v22  ;;  %3277 = vmax.xlane.f32.xlu1 %v3272_v22 }
0x31fd   :  { %v3278_v29 = vpop.xlane.xlu1 %3277 }
0x31fe   :  { %vm3279_vm9 = vcmp.eq.f32.partialorder %v3272_v22, %v3278_v29 }
0x31ff   :  { %4773 = vmatmul.mubr.msk.f32.vlgmr.msra.gmra.mrb[20].mxu1 %vm3279_vm9, %v5495_v46 }
0x3200   :  { %5171 = vmatpush3.bf16.msra.mxu1 %v6008_v16  ;;  %4783 = vmatprep.mubr.msk.f32.mxu1 %vm5492_vm0, %v5493_v2 }
0x3201   :  { %5172 = vmatprep.subr.bf16.mxu1 %v5491_v1 }
0x3204   :  { %5174 = vmatpush3.bf16.msra.mxu1 %v6011_v14 }
0x32d2   :  { %v3514_v34 = vpop.f32.mrb[20].mxu1 }
0x32d3   :  { %v5195_v38 = vadd.f32 %v3514_v34, %v5999_v53  ;;  %v4774_v6 = vpop.f32.mrb[21].mxu1 }
0x32d5   :  { %v3863_v17 = vmul.f32 -1.442695, %v5195_v38 }
0x32d7   :  { %5330 = vpow2.f32 %v3863_v17 }
0x32e1   :  { %v5331_v27 = vpop.eup %5330 }
0x32e2   :  { %v3521_v36 = vadd.f32 1.0, %v5331_v27 }
0x32e4   :  { %5332 = vrcp.f32 %v3521_v36 }
0x32ee   :  { %v5333_v4 = vpop.eup %5332 }
0x32ef   :  { %v3524_v46 = vmul.f32 2.0, %v5333_v4  ;;  %v3526_v1 = vmul.f32 %v5333_v4, %v6163_v50 }
0x32f1   :  { %v3864_v7 = vadd.f32 -1.0, %v3524_v46 }
0x32f3   :  { %3528 = vrot.lane.b32.xlu0 %v3864_v7, %s5496_s13 }
0x3365   :  { %v3529_v16 = vpop.permute.xlu0 %3528 }
0x3366   :  { %v3531_v2 = vmul.f32 %v5333_v4, %v3529_v16 }
0x3368   :  { %3533 = vrot.lane.b32.xlu0 %v3531_v2, %s5494_s0 }
0x33da   :  { %v3534_v14 = vpop.permute.xlu0 %3533 }
0x33db   :  { %v3536_v41 = vadd.f32 %v3534_v14, %v3526_v1 }
0x33dd   :  { %5334 = vtanh.f32 %v3536_v41 }
0x33e7   :  { %v5335_v53 = vpop.eup %5334 }
0x33e8   :  { %3539 = vrot.lane.b32.xlu0 %v5335_v53, %s5496_s13 }
0x345a   :  { %v3540_v10 = vpop.permute.xlu0 %3539 }
0x345b   :  { %v3542_v37 = vmul.f32 %v5333_v4, %v3540_v10 }
0x345d   :  { %3548 = vrot.lane.b32.xlu0 %v3542_v37, %s5494_s0 }
0x34cf   :  { %v3549_v51 = vpop.permute.xlu0 %3548 }
0x34d0   :  { %3730 = vst.msk [vmem:[#allocation11] sm:$0xff] %vm106_vm1, %v3549_v51  ;;  %4784 = vmatmul.mubr.msk.f32.vlgmr.msra.gmra.mrb[22].mxu1 %vm106_vm1, %v3549_v51 }
0x35a3   :  { %v3618_v33 = vpop.f32.mrb[22].mxu1 }
0x35a4   :  { %v5196_v54 = vadd.f32 %v6024_v25, %v3618_v33  ;;  %v4785_v56 = vpop.f32.mrb[23].mxu1 }
0x35a6   :  { %v3866_v52 = vmul.f32 -1.442695, %v5196_v54 }
0x35a8   :  { %5336 = vpow2.f32 %v3866_v52 }
0x35b2   :  { %v5337_v57 = vpop.eup %5336 }
0x35b3   :  { %v3625_v58 = vadd.f32 1.0, %v5337_v57 }
0x35b5   :  { %5338 = vrcp.f32 %v3625_v58 }
0x35bf   :  { %v5339_v59 = vpop.eup %5338 }
0x35c0   :  { %v3628_v60 = vmul.f32 2.0, %v5339_v59  ;;  %v3630_v3 = vmul.f32 %v5339_v59, %v6178_v24 }
0x35c2   :  { %v3867_v61 = vadd.f32 -1.0, %v3628_v60 }
0x35c4   :  { %3632 = vrot.lane.b32.xlu0 %v3867_v61, %s5496_s13 }
0x3636   :  { %v3633_v63 = vpop.permute.xlu0 %3632 }
0x3637   :  { %v3635_v0 = vmul.f32 %v5339_v59, %v3633_v63 }
0x3639   :  { %3637 = vrot.lane.b32.xlu0 %v3635_v0, %s5494_s0 }
0x36ab   :  { %v3638_v5 = vpop.permute.xlu0 %3637 }
0x36ac   :  { %v3640_v15 = vadd.f32 %v3638_v5, %v3630_v3 }
0x36ae   :  { %5340 = vtanh.f32 %v3640_v15 }
0x36b8   :  { %v5341_v25 = vpop.eup %5340 }
0x36b9   :  { %3643 = vrot.lane.b32.xlu0 %v5341_v25, %s5496_s13 }
0x36bd   :  { %3732 = vrot.lane.b32.xlu0 %v3536_v41, %s5497_s5 }
0x36c1   :  { %3741 = vrot.lane.b32.xlu0 %v3640_v15, %s5497_s5 }
0x372b   :  { %v3644_v11 = vpop.permute.xlu0 %3643 }
0x372c   :  { %v3646_v12 = vmul.f32 %v5339_v59, %v3644_v11 }
0x372e   :  { %3653 = vrot.lane.b32.xlu1 %v3646_v12, %s5494_s0 }
0x372f   :  { %v3733_v18 = vpop.permute.xlu0 %3732 }
0x3730   :  { %3736 = vst.msk [vmem:[#allocation11 + $0x10] sm:$0xff] %vm106_vm1, %v3733_v18 }
0x3733   :  { %v3742_v50 = vpop.permute.xlu0 %3741 }
0x3734   :  { %3745 = vst.msk [vmem:[#allocation11 + $0x18] sm:$0xff] %vm106_vm1, %v3742_v50 }
0x37a0   :  { %v3654_v20 = vpop.permute.xlu1 %3653 }
0x37a1   :  { %3739 = vst.msk [vmem:[#allocation11 + $0x8] sm:$0xff] %vm106_vm1, %v3654_v20  ;;  %4795 = vmatmul.mubr.msk.f32.vlgmr.msra.gmra.mrb[22].mxu0 %vm106_vm1, %v3654_v20 }
0x37a2   :  { %5441 = shalt.err (!%p5438_p8)
}
0x37a3   :  { %s5442_s29 = scalar_lea.hbm %s6280_s8, 512 }
0x37a4   :  { %p5443_p9 = scmp.ne.s32.totalorder %s6280_s8, %s5442_s29  ;;  %p5446_p10 = scmp.lt.u32.totalorder %s5442_s29, %s6280_s8 }
0x37a6   :  { %p5448_p11 = pnand %p5446_p10, %p5443_p9 }
0x37a8   :  { %5451 = shalt.err (!%p5448_p11)
}
0x37a9   :  { %3769 = dma.vmem_to_hbm [thread:$0]  %s3764_s24, 512, %s6280_s8, [#allocation12], %s5486_s17, %s5486_s17, %s5487_s18  }
0x37aa   :  { %s5499_s0 = smov [#allocation10]  }
0x37ab   :  { %s3751_s11 = sshll.u32 %s5499_s0, 4  ;;  %s3752_s11 = int_to_ptr.vmem [resolvable:$true] %s3751_s11 }
0x37ac   :  { %s5452_s12 = scalar_lea.vmem %s3752_s11, 1024  ;;  %p5457_p13 = scmp.lt.s32.totalorder %s3752_s11, %s3752_s11 }
0x37ad   :  { %p5453_p12 = scmp.ne.s32.totalorder %s3752_s11, %s5452_s12  ;;  %p5458_p0 = scmp.lt.s32.totalorder %s5452_s12, %s5452_s12 }
0x37af   :  { %p5459_p1 = por %p5458_p0, %p5457_p13 }
0x37b1   :  { %p5460_p2 = pnand %p5459_p1, %p5453_p12 }
0x3874   :  { %v3723_v23 = vpop.f32.mrb[22].mxu0 }
0x3875   :  { %v3724_v43 = vadd.f32 %v3723_v23, %v6083_v55  ;;  %v4796_v28 = vpop.f32.mrb[23].mxu0 }
0x3877   :  { %3728 = vst [vmem:[#allocation10 + $0x38] sm:$0xff] %v3724_v43 }
0x3878   :  { %5463 = shalt.err (!%p5460_p2)
}
0x3879   :  { %s5464_s15 = scalar_lea.hbm %s6279_s7, 1024 }
0x387a   :  { %p5465_p3 = scmp.ne.s32.totalorder %s6279_s7, %s5464_s15  ;;  %p5468_p4 = scmp.lt.u32.totalorder %s5464_s15, %s6279_s7 }
0x387c   :  { %p5470_p5 = pnand %p5468_p4, %p5465_p3 }
0x387e   :  { %5473 = shalt.err (!%p5470_p5)
}
0x387f   :  { %3757 = dma.vmem_to_hbm [thread:$0]  %s3752_s11, 1024, %s6279_s7, [#allocation4], %s5486_s17, %s5486_s17, %s5487_s18  }
0x3880   :  { %5480 = dma.done.wait [#allocation4], 1024  }
0x3881   :  { %5481 = vsyncadd [#allocation4], 4294966272 }
0x3882   :  { %5482 = dma.done.wait [#allocation12], 512  }
0x3883   :  { %5483 = vsyncadd [#allocation12], 4294966784 }
0x3884   :  { %3776 = vsyncpa [#allocation3], 1 }
0x3885   :  { %3777 = vsyncpa [#allocation6], 1 }
0x3886   :  { %3778 = vsyncpa [#allocation9], 1 }
0x3887   :  { %3779 = vsyncpa [#allocation4], 1 }
0x3888   :  { %3780 = vsyncpa [#allocation12], 1 }

</bundles_post_ra>
